<compile_context>
chip_gen: v7x
topology: tpu7x:2x2x1
jax: 0.10.0
libtpu: 0.0.40
codegen_flags: <defaults>
</compile_context>

<pallas_src>
import jax
import jax.numpy as jnp
from jax import lax
from jax.experimental import pallas as pl
from jax.experimental.pallas import tpu as pltpu

EPS = 1e-5
KSIZE = 3   # module default kernel_size=3, padding=1, stride=1
LANES = 128


def _pick_h_tile(H, W, Cin, Cpad):
    """Largest divisor of H whose per-tile working set stays well inside VMEM."""
    KF = KSIZE * KSIZE * Cin
    budget = 8 * 1024 * 1024  # conservative: leaves room for double-buffered outputs
    for cand in (128, 64, 32, 16, 8):
        if H % cand == 0:
            per_tile = (cand * W * (3 * Cpad * 4 + KF * 4)          # acc + out bufs + patch
                        + (cand + 2) * (W + 2) * Cin * 4)           # halo slab slice
            if per_tile <= budget:
                return cand
    return 8 if H % 8 == 0 else H


def _pick_m_tile(M, Cpad):
    budget = 8 * 1024 * 1024
    for cand in (2048, 1024, 512, 256, 128):
        if M % cand == 0 and 4 * cand * Cpad * 4 <= budget:   # in+out, double-buffered
            return cand
    return M


def _conv_bn_relu_impl(x_nchw, w_oihw, bias, gamma, beta):
    # Conv bias is mathematically cancelled by training-mode BN's mean subtraction.
    del bias
    N, Cin, H, W = x_nchw.shape
    Cout = w_oihw.shape[0]
    Cpad = ((Cout + LANES - 1) // LANES) * LANES       # lane-pad output channels
    KF = KSIZE * KSIZE * Cin                           # folded contraction dim (9*Cin)
    TH = _pick_h_tile(H, W, Cin, Cpad)                 # output rows per pass-1 tile
    n_htiles = H // TH
    M = N * H * W
    Hp, Wp = H + 2, W + 2

    # ---- layout plumbing: NCHW -> NHWC, halo pad, fold weights to (9*Cin, Cpad) ----
    # TODO(synk): fold the spatial zero-pad / transpose into the tile DMA (manual halo
    # copy from an ANY-space ref) to save one HBM round trip of x at real layer sizes.
    x_pad = jnp.pad(jnp.transpose(x_nchw, (0, 2, 3, 1)),
                    ((0, 0), (1, 1), (1, 1), (0, 0)))                  # (N, Hp, Wp, Cin)
    w_fold = jnp.transpose(w_oihw, (2, 3, 1, 0)).reshape(KF, Cout)     # (kh,kw,cin) major
    w_fold = jnp.pad(w_fold, ((0, 0), (0, Cpad - Cout))).astype(jnp.float32)

    # ---- pass 1: conv (one lane-dense MXU matmul per tile) + sum / sumsq stats ----
    def conv_stats_kernel(xp_ref, w_ref, out_ref, stats_ref):
        h = pl.program_id(1)
        r0 = pl.multiple_of(h * TH, TH)
        # (TH+2)-row halo slab for this tile; the full padded image is never loaded
        # as a value, and the ref itself is DMA'd only once per batch element.
        xs = xp_ref[0, pl.ds(r0, TH + 2), :, :].astype(jnp.float32)    # (TH+2, Wp, Cin)

        # in-kernel im2col: 9 shifted views -> (TH*W, 9*Cin), single matmul on the MXU
        cols = []
        for kh in range(KSIZE):
            for kw in range(KSIZE):
                cols.append(xs[kh:kh + TH, kw:kw + W, :].reshape(TH * W, Cin))
        patch = jnp.concatenate(cols, axis=-1)                         # (TH*W, KF)
        acc = jnp.dot(patch, w_ref[...], preferred_element_type=jnp.float32)
        out_ref[...] = acc                                             # lane-dense store

        ssum = jnp.sum(acc, axis=0, keepdims=True)                     # (1, Cpad)
        ssq = jnp.sum(acc * acc, axis=0, keepdims=True)                # (1, Cpad)

        @pl.when(h == 0)
        def _():
            stats_ref[...] = jnp.zeros_like(stats_ref)

        # stats block index is invariant across h -> stays resident in VMEM, single
        # HBM writeback per batch element.
        stats_ref[...] += jnp.concatenate([ssum, ssq], axis=0)[None]   # (1, 2, Cpad)

    conv_out, stats = pl.pallas_call(
        conv_stats_kernel,
        out_shape=(jax.ShapeDtypeStruct((M, Cpad), jnp.float32),
                   jax.ShapeDtypeStruct((N, 2, Cpad), jnp.float32)),
        grid=(N, n_htiles),
        in_specs=[
            pl.BlockSpec((1, Hp, Wp, Cin), lambda n, h: (n, 0, 0, 0)),
            pl.BlockSpec((KF, Cpad), lambda n, h: (0, 0)),
        ],
        out_specs=[
            pl.BlockSpec((TH * W, Cpad), lambda n, h: (n * n_htiles + h, 0)),
            pl.BlockSpec((1, 2, Cpad), lambda n, h: (n, 0, 0)),
        ],
        compiler_params=pltpu.CompilerParams(
            dimension_semantics=("parallel", "arbitrary")),
    )(x_pad, w_fold)

    # ---- fold batch stats into per-channel scale/shift (tiny (Cout,) math) --------
    count = float(M)
    ssum = jnp.sum(stats[:, 0, :Cout], axis=0)
    ssq = jnp.sum(stats[:, 1, :Cout], axis=0)
    mean = ssum / count
    var = jnp.maximum(ssq / count - mean * mean, 0.0)   # biased variance (train-mode BN)
    inv = lax.rsqrt(var + EPS)
    scale = gamma.astype(jnp.float32) * inv
    shift = beta.astype(jnp.float32) - mean * scale
    scale = jnp.pad(scale, (0, Cpad - Cout)).reshape(1, Cpad)
    shift = jnp.pad(shift, (0, Cpad - Cout)).reshape(1, Cpad)

    # ---- pass 2: normalize + affine + ReLU (fully parallel, lane-dense tiles),
    #      written in place over the pass-1 conv buffer (input_output_aliases) -------
    TM = _pick_m_tile(M, Cpad)

    def bn_relu_kernel(x_ref, sc_ref, sh_ref, o_ref):
        o_ref[...] = jnp.maximum(x_ref[...] * sc_ref[...] + sh_ref[...], 0.0)

    out2d = pl.pallas_call(
        bn_relu_kernel,
        out_shape=jax.ShapeDtypeStruct((M, Cpad), jnp.float32),
        grid=(M // TM,),
        in_specs=[
            pl.BlockSpec((TM, Cpad), lambda i: (i, 0)),
            pl.BlockSpec((1, Cpad), lambda i: (0, 0)),
            pl.BlockSpec((1, Cpad), lambda i: (0, 0)),
        ],
        out_specs=pl.BlockSpec((TM, Cpad), lambda i: (i, 0)),
        input_output_aliases={0: 0},
        compiler_params=pltpu.CompilerParams(dimension_semantics=("parallel",)),
    )(conv_out, scale, shift)

    # slice lane padding off, reshape / transpose back to PyTorch NCHW in the wrapper
    out_nhwc = out2d[:, :Cout].reshape(N, H, W, Cout)
    return jnp.transpose(out_nhwc, (0, 3, 1, 2)).astype(x_nchw.dtype)


conv_bn_relu = jax.jit(_conv_bn_relu_impl)


def _reference(x_nchw, w_oihw, bias, gamma, beta):
    """Pure-JAX reference mirroring PyTorch conv + bn(train) + relu (bias included)."""
    y = lax.conv_general_dilated(
        x_nchw, w_oihw, window_strides=(1, 1), padding=((1, 1), (1, 1)),
        dimension_numbers=("NCHW", "OIHW", "NCHW"))
    y = y + bias[None, :, None, None]
    mean = jnp.mean(y, axis=(0, 2, 3), keepdims=True)
    var = jnp.mean((y - mean) ** 2, axis=(0, 2, 3), keepdims=True)
    y = (y - mean) / jnp.sqrt(var + EPS)
    y = y * gamma[None, :, None, None] + beta[None, :, None, None]
    return jnp.maximum(y, 0.0)


if __name__ == "__main__":
    key = jax.random.PRNGKey(0)
    k_x, k_w, k_b, k_g, k_be = jax.random.split(key, 5)

    N, Cin, H, W = 2, 4, 16, 16
    Cout = 8

    x = jax.random.normal(k_x, (N, Cin, H, W), dtype=jnp.float32)
    w = jax.random.normal(k_w, (Cout, Cin, KSIZE, KSIZE), dtype=jnp.float32) * 0.1
    b = jax.random.normal(k_b, (Cout,), dtype=jnp.float32) * 0.1
    gamma = 1.0 + 0.1 * jax.random.normal(k_g, (Cout,), dtype=jnp.float32)
    beta = 0.1 * jax.random.normal(k_be, (Cout,), dtype=jnp.float32)

    out = jax.block_until_ready(conv_bn_relu(x, w, b, gamma, beta))
    ref = jax.block_until_ready(_reference(x, w, b, gamma, beta))

    err = float(jnp.max(jnp.abs(out - ref)))
    assert out.shape == (N, Cout, H, W), out.shape
    assert err < 2e-3, f"mismatch vs reference: max abs err {err}"

    print("KERNEL_OK")
</pallas_src>

<mosaic_0001>
module attributes {stable_mosaic.version = 11 : i64} {
  func.func @conv_stats_kernel(%arg0: i32, %arg1: i32, %arg2: memref<1x18x18x4xf32, #tpu.memory_space<vmem>>, %arg3: memref<36x128xf32, #tpu.memory_space<vmem>>, %arg4: memref<256x128xf32, #tpu.memory_space<vmem>>, %arg5: memref<1x2x128xf32, #tpu.memory_space<vmem>>) attributes {dimension_semantics = [#tpu.dimension_semantics<parallel>, #tpu.dimension_semantics<arbitrary>], iteration_bounds = array<i64: 2, 1>, scalar_prefetch = 0 : i64, scratch_operands = 0 : i64, tpu.core_type = #tpu.core_type<tc>, window_params = [{transform_indices = @transform_0, window_bounds = array<i64: 1, 18, 18, 4>}, {pipeline_mode = #tpu.pipeline_mode<synchronous>, transform_indices = @transform_1, window_bounds = array<i64: 36, 128>}, {transform_indices = @transform_2, window_bounds = array<i64: 256, 128>}, {transform_indices = @transform_3, window_bounds = array<i64: 1, 2, 128>}]} {
    %c16_i32 = arith.constant 16 : i32
    %0 = arith.muli %arg1, %c16_i32 : i32
    %1 = tpu.assume_multiple %0, 16 : i32
    %c0 = arith.constant 0 : index
    %2 = arith.index_cast %1 : i32 to index
    %c0_0 = arith.constant 0 : index
    %c0_1 = arith.constant 0 : index
    %3 = vector.load %arg2[%c0, %2, %c0_0, %c0_1] : memref<1x18x18x4xf32, #tpu.memory_space<vmem>>, vector<1x18x18x4xf32>
    %4 = vector.shape_cast %3 : vector<1x18x18x4xf32> to vector<18x18x4xf32>
    %5 = vector.extract_strided_slice %4 {offsets = [0, 0, 0], sizes = [16, 16, 4], strides = [1, 1, 1]} : vector<18x18x4xf32> to vector<16x16x4xf32>
    %6 = vector.shape_cast %5 : vector<16x16x4xf32> to vector<256x4xf32>
    %7 = vector.extract_strided_slice %4 {offsets = [0, 1, 0], sizes = [16, 16, 4], strides = [1, 1, 1]} : vector<18x18x4xf32> to vector<16x16x4xf32>
    %8 = vector.shape_cast %7 : vector<16x16x4xf32> to vector<256x4xf32>
    %9 = vector.extract_strided_slice %4 {offsets = [0, 2, 0], sizes = [16, 16, 4], strides = [1, 1, 1]} : vector<18x18x4xf32> to vector<16x16x4xf32>
    %10 = vector.shape_cast %9 : vector<16x16x4xf32> to vector<256x4xf32>
    %11 = vector.extract_strided_slice %4 {offsets = [1, 0, 0], sizes = [16, 16, 4], strides = [1, 1, 1]} : vector<18x18x4xf32> to vector<16x16x4xf32>
    %12 = vector.shape_cast %11 : vector<16x16x4xf32> to vector<256x4xf32>
    %13 = vector.extract_strided_slice %4 {offsets = [1, 1, 0], sizes = [16, 16, 4], strides = [1, 1, 1]} : vector<18x18x4xf32> to vector<16x16x4xf32>
    %14 = vector.shape_cast %13 : vector<16x16x4xf32> to vector<256x4xf32>
    %15 = vector.extract_strided_slice %4 {offsets = [1, 2, 0], sizes = [16, 16, 4], strides = [1, 1, 1]} : vector<18x18x4xf32> to vector<16x16x4xf32>
    %16 = vector.shape_cast %15 : vector<16x16x4xf32> to vector<256x4xf32>
    %17 = vector.extract_strided_slice %4 {offsets = [2, 0, 0], sizes = [16, 16, 4], strides = [1, 1, 1]} : vector<18x18x4xf32> to vector<16x16x4xf32>
    %18 = vector.shape_cast %17 : vector<16x16x4xf32> to vector<256x4xf32>
    %19 = vector.extract_strided_slice %4 {offsets = [2, 1, 0], sizes = [16, 16, 4], strides = [1, 1, 1]} : vector<18x18x4xf32> to vector<16x16x4xf32>
    %20 = vector.shape_cast %19 : vector<16x16x4xf32> to vector<256x4xf32>
    %21 = vector.extract_strided_slice %4 {offsets = [2, 2, 0], sizes = [16, 16, 4], strides = [1, 1, 1]} : vector<18x18x4xf32> to vector<16x16x4xf32>
    %22 = vector.shape_cast %21 : vector<16x16x4xf32> to vector<256x4xf32>
    %23 = tpu.concatenate %6, %8, %10, %12, %14, %16, %18, %20, %22 in 1 : vector<256x4xf32>, vector<256x4xf32>, vector<256x4xf32>, vector<256x4xf32>, vector<256x4xf32>, vector<256x4xf32>, vector<256x4xf32>, vector<256x4xf32>, vector<256x4xf32> -> vector<256x36xf32>
    %c0_2 = arith.constant 0 : index
    %c0_3 = arith.constant 0 : index
    %24 = vector.load %arg3[%c0_2, %c0_3] : memref<36x128xf32, #tpu.memory_space<vmem>>, vector<36x128xf32>
    %cst = arith.constant dense<0.000000e+00> : vector<256x128xf32>
    %25 = tpu.matmul %23, %24, %cst {dimension_numbers = #tpu.dot_dimension_numbers<[1], [0], [0], [1], [0, 0, 1, 1], [], []>} : vector<256x36xf32>, vector<36x128xf32>, vector<256x128xf32> -> vector<256x128xf32>
    %c0_4 = arith.constant 0 : index
    %c0_5 = arith.constant 0 : index
    %26 = vector.load %arg4[%c0_4, %c0_5] : memref<256x128xf32, #tpu.memory_space<vmem>>, vector<256x128xf32>
    tpu.vector_store %arg4[%c0_4, %c0_5], %25 {strides = array<i32>} : memref<256x128xf32, #tpu.memory_space<vmem>>, vector<256x128xf32>,
    %cst_6 = arith.constant dense<0.000000e+00> : vector<128xf32>
    %27 = vector.multi_reduction <add>, %25, %cst_6 [0] : vector<256x128xf32> to vector<128xf32>
    %28 = vector.shape_cast %27 : vector<128xf32> to vector<1x128xf32>
    %29 = arith.mulf %25, %25 : vector<256x128xf32>
    %cst_7 = arith.constant dense<0.000000e+00> : vector<128xf32>
    %30 = vector.multi_reduction <add>, %29, %cst_7 [0] : vector<256x128xf32> to vector<128xf32>
    %31 = vector.shape_cast %30 : vector<128xf32> to vector<1x128xf32>
    %c0_i32 = arith.constant 0 : i32
    %32 = arith.cmpi eq, %arg1, %c0_i32 : i32
    %33 = arith.extui %32 : i1 to i32
    %c0_i32_8 = arith.constant 0 : i32
    %34 = arith.cmpi ne, %33, %c0_i32_8 : i32
    scf.if %34 {
      %cst_15 = arith.constant 0.000000e+00 : f32
      %40 = vector.broadcast %cst_15 : f32 to vector<1x2x128xf32>
      %c0_16 = arith.constant 0 : index
      %c0_17 = arith.constant 0 : index
      %c0_18 = arith.constant 0 : index
      %41 = vector.load %arg5[%c0_16, %c0_17, %c0_18] : memref<1x2x128xf32, #tpu.memory_space<vmem>>, vector<1x2x128xf32>
      tpu.vector_store %arg5[%c0_16, %c0_17, %c0_18], %40 {strides = array<i32>} : memref<1x2x128xf32, #tpu.memory_space<vmem>>, vector<1x2x128xf32>,
    } else {
    }
    %c0_9 = arith.constant 0 : index
    %c0_10 = arith.constant 0 : index
    %c0_11 = arith.constant 0 : index
    %35 = vector.load %arg5[%c0_9, %c0_10, %c0_11] : memref<1x2x128xf32, #tpu.memory_space<vmem>>, vector<1x2x128xf32>
    %36 = tpu.concatenate %28, %31 in 0 : vector<1x128xf32>, vector<1x128xf32> -> vector<2x128xf32>
    %37 = vector.shape_cast %36 : vector<2x128xf32> to vector<1x2x128xf32>
    %38 = arith.addf %35, %37 : vector<1x2x128xf32>
    %c0_12 = arith.constant 0 : index
    %c0_13 = arith.constant 0 : index
    %c0_14 = arith.constant 0 : index
    %39 = vector.load %arg5[%c0_12, %c0_13, %c0_14] : memref<1x2x128xf32, #tpu.memory_space<vmem>>, vector<1x2x128xf32>
    tpu.vector_store %arg5[%c0_12, %c0_13, %c0_14], %38 {strides = array<i32>} : memref<1x2x128xf32, #tpu.memory_space<vmem>>, vector<1x2x128xf32>,
    return
  }
  func.func @transform_0(%arg0: i32, %arg1: i32) -> (i32, i32, i32, i32) {
    %c0_i32 = arith.constant 0 : i32
    %c0_i32_0 = arith.constant 0 : i32
    %c0_i32_1 = arith.constant 0 : i32
    %c0_i32_2 = arith.constant 0 : i32
    return %arg0, %c0_i32, %c0_i32_0, %c0_i32_1 : i32, i32, i32, i32
  }
  func.func @transform_1(%arg0: i32, %arg1: i32) -> (i32, i32) {
    %c0_i32 = arith.constant 0 : i32
    %c0_i32_0 = arith.constant 0 : i32
    %c0_i32_1 = arith.constant 0 : i32
    return %c0_i32, %c0_i32_0 : i32, i32
  }
  func.func @transform_2(%arg0: i32, %arg1: i32) -> (i32, i32) {
    %c1_i32 = arith.constant 1 : i32
    %0 = arith.muli %arg0, %c1_i32 : i32
    %1 = arith.addi %0, %arg1 : i32
    %c0_i32 = arith.constant 0 : i32
    %c0_i32_0 = arith.constant 0 : i32
    return %1, %c0_i32 : i32, i32
  }
  func.func @transform_3(%arg0: i32, %arg1: i32) -> (i32, i32, i32) {
    %c0_i32 = arith.constant 0 : i32
    %c0_i32_0 = arith.constant 0 : i32
    %c0_i32_1 = arith.constant 0 : i32
    return %arg0, %c0_i32, %c0_i32_0 : i32, i32, i32
  }
}

module attributes {stable_mosaic.version = 11 : i64} {
  func.func @bn_relu_kernel(%arg0: i32, %arg1: memref<512x128xf32, #tpu.memory_space<vmem>>, %arg2: memref<1x128xf32, #tpu.memory_space<vmem>>, %arg3: memref<1x128xf32, #tpu.memory_space<vmem>>, %arg4: memref<512x128xf32, #tpu.memory_space<vmem>>) attributes {dimension_semantics = [#tpu.dimension_semantics<parallel>], iteration_bounds = array<i64: 1>, scalar_prefetch = 0 : i64, scratch_operands = 0 : i64, tpu.core_type = #tpu.core_type<tc>, window_params = [{transform_indices = @transform_0, window_bounds = array<i64: 512, 128>}, {pipeline_mode = #tpu.pipeline_mode<synchronous>, transform_indices = @transform_1, window_bounds = array<i64: 1, 128>}, {pipeline_mode = #tpu.pipeline_mode<synchronous>, transform_indices = @transform_2, window_bounds = array<i64: 1, 128>}, {transform_indices = @transform_3, window_bounds = array<i64: 512, 128>}]} {
    %c0 = arith.constant 0 : index
    %c0_0 = arith.constant 0 : index
    %0 = vector.load %arg1[%c0, %c0_0] : memref<512x128xf32, #tpu.memory_space<vmem>>, vector<512x128xf32>
    %c0_1 = arith.constant 0 : index
    %c0_2 = arith.constant 0 : index
    %1 = vector.load %arg2[%c0_1, %c0_2] : memref<1x128xf32, #tpu.memory_space<vmem>>, vector<1x128xf32>
    %2 = vector.broadcast %1 : vector<1x128xf32> to vector<512x128xf32>
    %3 = arith.mulf %0, %2 : vector<512x128xf32>
    %c0_3 = arith.constant 0 : index
    %c0_4 = arith.constant 0 : index
    %4 = vector.load %arg3[%c0_3, %c0_4] : memref<1x128xf32, #tpu.memory_space<vmem>>, vector<1x128xf32>
    %5 = vector.broadcast %4 : vector<1x128xf32> to vector<512x128xf32>
    %6 = arith.addf %3, %5 : vector<512x128xf32>
    %cst = arith.constant 0.000000e+00 : f32
    %7 = vector.broadcast %cst : f32 to vector<512x128xf32>
    %8 = arith.maximumf %6, %7 : vector<512x128xf32>
    %c0_5 = arith.constant 0 : index
    %c0_6 = arith.constant 0 : index
    %9 = vector.load %arg4[%c0_5, %c0_6] : memref<512x128xf32, #tpu.memory_space<vmem>>, vector<512x128xf32>
    tpu.vector_store %arg4[%c0_5, %c0_6], %8 {strides = array<i32>} : memref<512x128xf32, #tpu.memory_space<vmem>>, vector<512x128xf32>,
    return
  }
  func.func @transform_0(%arg0: i32) -> (i32, i32) {
    %c0_i32 = arith.constant 0 : i32
    %c0_i32_0 = arith.constant 0 : i32
    return %arg0, %c0_i32 : i32, i32
  }
  func.func @transform_1(%arg0: i32) -> (i32, i32) {
    %c0_i32 = arith.constant 0 : i32
    %c0_i32_0 = arith.constant 0 : i32
    %c0_i32_1 = arith.constant 0 : i32
    return %c0_i32, %c0_i32_0 : i32, i32
  }
  func.func @transform_2(%arg0: i32) -> (i32, i32) {
    %c0_i32 = arith.constant 0 : i32
    %c0_i32_0 = arith.constant 0 : i32
    %c0_i32_1 = arith.constant 0 : i32
    return %c0_i32, %c0_i32_0 : i32, i32
  }
  func.func @transform_3(%arg0: i32) -> (i32, i32) {
    %c0_i32 = arith.constant 0 : i32
    %c0_i32_0 = arith.constant 0 : i32
    return %arg0, %c0_i32 : i32, i32
  }
}

</mosaic_0001>

<bundles_post_ra>
// kernel: _conv_bn_relu_impl.3
= control target key start
LH: loop header
LB: loop body
LE: loop exit
PB: predicated region body
PF: predicated region fallthrough
CT: control target
= control target key end

     0   :  { %s896_s0 = inlined_call_operand.vmem [shape: f32[512,128], index: 0, kind: input, shape index: {}, may-alias: {0,3}]   ;;  %s897_s1 = inlined_call_operand.vmem [shape: f32[1,128], index: 1, kind: input, shape index: {}]   ;;  %s898_s2 = inlined_call_operand.vmem [shape: f32[1,128], index: 2, kind: input, shape index: {}]   ;;  %s899_s3 = inlined_call_operand.vmem [shape: f32[512,128], index: 3, kind: output, shape index: {}, may-alias: {0,3}]  }
   0x1   :  { %v14_v0 = vld [vmem:[%s896_s0] sm:$0xff]  ;;  %v15_v4 = vld [vmem:[%s896_s0 + $0x8] sm:$0xff]  ;;  %v16_v5 = vld [vmem:[%s896_s0 + $0x10] sm:$0xff] }
   0x2   :  { %v380_v1 = vld [vmem:[%s897_s1] ss:$0 sm:$0xff]  ;;  %v17_v6 = vld [vmem:[%s896_s0 + $0x18] sm:$0xff]  ;;  %v19_v11 = vld [vmem:[%s896_s0 + $0x28] sm:$0xff] }
   0x3   :  { %v385_v2 = vld [vmem:[%s898_s2] ss:$0 sm:$0xff]  ;;  %v85_v3 = vmul.f32 %v380_v1, %v14_v0  ;;  %v86_v7 = vmul.f32 %v380_v1, %v15_v4  ;;  %v87_v8 = vmul.f32 %v380_v1, %v16_v5  ;;  %v88_v9 = vmul.f32 %v380_v1, %v17_v6  ;;  %v20_v12 = vld [vmem:[%s896_s0 + $0x30] sm:$0xff]  ;;  %v21_v17 = vld [vmem:[%s896_s0 + $0x38] sm:$0xff] }
   0x4   :  { %v18_v10 = vld [vmem:[%s896_s0 + $0x20] sm:$0xff]  ;;  %v90_v15 = vmul.f32 %v380_v1, %v19_v11  ;;  %v91_v16 = vmul.f32 %v380_v1, %v20_v12  ;;  %v92_v21 = vmul.f32 %v380_v1, %v21_v17  ;;  %v23_v27 = vld [vmem:[%s896_s0 + $0x48] sm:$0xff]  ;;  %v24_v28 = vld [vmem:[%s896_s0 + $0x50] sm:$0xff] }
   0x5   :  { %v156_v13 = vadd.f32 %v385_v2, %v85_v3  ;;  %v89_v14 = vmul.f32 %v380_v1, %v18_v10  ;;  %v157_v18 = vadd.f32 %v385_v2, %v86_v7  ;;  %v158_v19 = vadd.f32 %v385_v2, %v87_v8  ;;  %v22_v22 = vld [vmem:[%s896_s0 + $0x40] sm:$0xff]  ;;  %v25_v29 = vld [vmem:[%s896_s0 + $0x58] sm:$0xff]  ;;  %v27_v35 = vld [vmem:[%s896_s0 + $0x68] sm:$0xff] }
   0x6   :  { %v159_v20 = vadd.f32 %v385_v2, %v88_v9  ;;  %v161_v25 = vadd.f32 %v385_v2, %v90_v15  ;;  %v162_v26 = vadd.f32 %v385_v2, %v91_v16  ;;  %v163_v33 = vadd.f32 %v385_v2, %v92_v21  ;;  %v26_v34 = vld [vmem:[%s896_s0 + $0x60] sm:$0xff]  ;;  %v28_v36 = vld [vmem:[%s896_s0 + $0x70] sm:$0xff] }
   0x7   :  { %v220_v23 = vmax.f32 %v156_v13, 0.0  ;;  %v160_v24 = vadd.f32 %v385_v2, %v89_v14  ;;  %v221_v30 = vmax.f32 %v157_v18, 0.0  ;;  %v222_v31 = vmax.f32 %v158_v19, 0.0 }
   0x8   :  { %v223_v32 = vmax.f32 %v159_v20, 0.0  ;;  %v225_v38 = vmax.f32 %v161_v25, 0.0  ;;  %v226_v39 = vmax.f32 %v162_v26, 0.0  ;;  %v93_v40 = vmul.f32 %v380_v1, %v22_v22 }
   0x9   :  { %284 = vst [vmem:[%s899_s3] sm:$0xff] %v220_v23  ;;  %v224_v37 = vmax.f32 %v160_v24, 0.0  ;;  %v227_v42 = vmax.f32 %v163_v33, 0.0  ;;  %v94_v43 = vmul.f32 %v380_v1, %v23_v27  ;;  %v95_v44 = vmul.f32 %v380_v1, %v24_v28 }
   0xa   :  { %v96_v45 = vmul.f32 %v380_v1, %v25_v29  ;;  %v164_v46 = vadd.f32 %v385_v2, %v93_v40  ;;  %v97_v47 = vmul.f32 %v380_v1, %v26_v34  ;;  %v98_v48 = vmul.f32 %v380_v1, %v27_v35 }
   0xb   :  { %v99_v49 = vmul.f32 %v380_v1, %v28_v36  ;;  %v165_v50 = vadd.f32 %v385_v2, %v94_v43  ;;  %v166_v51 = vadd.f32 %v385_v2, %v95_v44 }
   0xc   :  { %v167_v52 = vadd.f32 %v385_v2, %v96_v45  ;;  %v228_v55 = vmax.f32 %v164_v46, 0.0  ;;  %v168_v56 = vadd.f32 %v385_v2, %v97_v47  ;;  %v169_v57 = vadd.f32 %v385_v2, %v98_v48 }
   0xd   :  { %v170_v58 = vadd.f32 %v385_v2, %v99_v49  ;;  %v229_v62 = vmax.f32 %v165_v50, 0.0  ;;  %v230_v63 = vmax.f32 %v166_v51, 0.0 }
   0xe   :  { %v231_v0 = vmax.f32 %v167_v52, 0.0  ;;  %v232_v7 = vmax.f32 %v168_v56, 0.0  ;;  %v233_v8 = vmax.f32 %v169_v57, 0.0 }
   0xf   :  { %v234_v9 = vmax.f32 %v170_v58, 0.0 }
  0x10   :  { %v29_v41 = vld [vmem:[%s896_s0 + $0x78] sm:$0xff] }
  0x11   :  { %285 = vst [vmem:[%s899_s3 + $0x8] sm:$0xff] %v221_v30  ;;  %286 = vst [vmem:[%s899_s3 + $0x10] sm:$0xff] %v222_v31  ;;  %v100_v53 = vmul.f32 %v380_v1, %v29_v41 }
  0x12   :  { %287 = vst [vmem:[%s899_s3 + $0x18] sm:$0xff] %v223_v32  ;;  %288 = vst [vmem:[%s899_s3 + $0x20] sm:$0xff] %v224_v37 }
  0x13   :  { %289 = vst [vmem:[%s899_s3 + $0x28] sm:$0xff] %v225_v38  ;;  %290 = vst [vmem:[%s899_s3 + $0x30] sm:$0xff] %v226_v39  ;;  %v171_v3 = vadd.f32 %v385_v2, %v100_v53 }
  0x14   :  { %291 = vst [vmem:[%s899_s3 + $0x38] sm:$0xff] %v227_v42 }
  0x15   :  { %v235_v12 = vmax.f32 %v171_v3, 0.0 }
  0x1b   :  { %v30_v54 = vld [vmem:[%s896_s0 + $0x80] sm:$0xff]  ;;  %v31_v59 = vld [vmem:[%s896_s0 + $0x88] sm:$0xff]  ;;  %v32_v60 = vld [vmem:[%s896_s0 + $0x90] sm:$0xff] }
  0x1c   :  { %v33_v61 = vld [vmem:[%s896_s0 + $0x98] sm:$0xff]  ;;  %v34_v4 = vld [vmem:[%s896_s0 + $0xa0] sm:$0xff]  ;;  %v35_v5 = vld [vmem:[%s896_s0 + $0xa8] sm:$0xff]  ;;  %v101_v10 = vmul.f32 %v380_v1, %v30_v54  ;;  %v102_v13 = vmul.f32 %v380_v1, %v31_v59  ;;  %v103_v14 = vmul.f32 %v380_v1, %v32_v60 }
  0x1d   :  { %v36_v6 = vld [vmem:[%s896_s0 + $0xb0] sm:$0xff]  ;;  %v104_v15 = vmul.f32 %v380_v1, %v33_v61  ;;  %v105_v17 = vmul.f32 %v380_v1, %v34_v4  ;;  %v106_v18 = vmul.f32 %v380_v1, %v35_v5 }
  0x1e   :  { %292 = vst [vmem:[%s899_s3 + $0x40] sm:$0xff] %v228_v55  ;;  %v172_v16 = vadd.f32 %v385_v2, %v101_v10  ;;  %v107_v19 = vmul.f32 %v380_v1, %v36_v6  ;;  %v173_v20 = vadd.f32 %v385_v2, %v102_v13  ;;  %v174_v21 = vadd.f32 %v385_v2, %v103_v14 }
  0x1f   :  { %v175_v22 = vadd.f32 %v385_v2, %v104_v15  ;;  %v176_v26 = vadd.f32 %v385_v2, %v105_v17  ;;  %v177_v27 = vadd.f32 %v385_v2, %v106_v18 }
  0x20   :  { %v236_v25 = vmax.f32 %v172_v16, 0.0  ;;  %v178_v28 = vadd.f32 %v385_v2, %v107_v19  ;;  %v237_v32 = vmax.f32 %v173_v20, 0.0  ;;  %v238_v33 = vmax.f32 %v174_v21, 0.0 }
  0x21   :  { %v239_v34 = vmax.f32 %v175_v22, 0.0  ;;  %v240_v39 = vmax.f32 %v176_v26, 0.0  ;;  %v241_v40 = vmax.f32 %v177_v27, 0.0 }
  0x22   :  { %v242_v41 = vmax.f32 %v178_v28, 0.0 }
  0x25   :  { %v37_v11 = vld [vmem:[%s896_s0 + $0xb8] sm:$0xff] }
  0x26   :  { %293 = vst [vmem:[%s899_s3 + $0x48] sm:$0xff] %v229_v62  ;;  %294 = vst [vmem:[%s899_s3 + $0x50] sm:$0xff] %v230_v63  ;;  %v108_v23 = vmul.f32 %v380_v1, %v37_v11 }
  0x27   :  { %295 = vst [vmem:[%s899_s3 + $0x58] sm:$0xff] %v231_v0  ;;  %296 = vst [vmem:[%s899_s3 + $0x60] sm:$0xff] %v232_v7 }
  0x28   :  { %297 = vst [vmem:[%s899_s3 + $0x68] sm:$0xff] %v233_v8  ;;  %298 = vst [vmem:[%s899_s3 + $0x70] sm:$0xff] %v234_v9  ;;  %v179_v35 = vadd.f32 %v385_v2, %v108_v23 }
  0x29   :  { %299 = vst [vmem:[%s899_s3 + $0x78] sm:$0xff] %v235_v12 }
  0x2a   :  { %v243_v44 = vmax.f32 %v179_v35, 0.0 }
  0x30   :  { %v38_v24 = vld [vmem:[%s896_s0 + $0xc0] sm:$0xff]  ;;  %v39_v29 = vld [vmem:[%s896_s0 + $0xc8] sm:$0xff]  ;;  %v40_v30 = vld [vmem:[%s896_s0 + $0xd0] sm:$0xff] }
  0x31   :  { %v41_v31 = vld [vmem:[%s896_s0 + $0xd8] sm:$0xff]  ;;  %v42_v36 = vld [vmem:[%s896_s0 + $0xe0] sm:$0xff]  ;;  %v43_v37 = vld [vmem:[%s896_s0 + $0xe8] sm:$0xff]  ;;  %v109_v42 = vmul.f32 %v380_v1, %v38_v24  ;;  %v110_v45 = vmul.f32 %v380_v1, %v39_v29  ;;  %v111_v46 = vmul.f32 %v380_v1, %v40_v30 }
  0x32   :  { %v44_v38 = vld [vmem:[%s896_s0 + $0xf0] sm:$0xff]  ;;  %v112_v47 = vmul.f32 %v380_v1, %v41_v31  ;;  %v113_v49 = vmul.f32 %v380_v1, %v42_v36  ;;  %v114_v50 = vmul.f32 %v380_v1, %v43_v37 }
  0x33   :  { %300 = vst [vmem:[%s899_s3 + $0x80] sm:$0xff] %v236_v25  ;;  %v180_v48 = vadd.f32 %v385_v2, %v109_v42  ;;  %v115_v51 = vmul.f32 %v380_v1, %v44_v38  ;;  %v181_v52 = vadd.f32 %v385_v2, %v110_v45  ;;  %v182_v53 = vadd.f32 %v385_v2, %v111_v46 }
  0x34   :  { %v183_v54 = vadd.f32 %v385_v2, %v112_v47  ;;  %v184_v58 = vadd.f32 %v385_v2, %v113_v49  ;;  %v185_v59 = vadd.f32 %v385_v2, %v114_v50 }
  0x35   :  { %v244_v57 = vmax.f32 %v180_v48, 0.0  ;;  %v186_v60 = vadd.f32 %v385_v2, %v115_v51  ;;  %v245_v0 = vmax.f32 %v181_v52, 0.0  ;;  %v246_v3 = vmax.f32 %v182_v53, 0.0 }
  0x36   :  { %v247_v4 = vmax.f32 %v183_v54, 0.0  ;;  %v248_v9 = vmax.f32 %v184_v58, 0.0  ;;  %v249_v10 = vmax.f32 %v185_v59, 0.0 }
  0x37   :  { %v250_v11 = vmax.f32 %v186_v60, 0.0 }
  0x3a   :  { %v45_v43 = vld [vmem:[%s896_s0 + $0xf8] sm:$0xff] }
  0x3b   :  { %301 = vst [vmem:[%s899_s3 + $0x88] sm:$0xff] %v237_v32  ;;  %302 = vst [vmem:[%s899_s3 + $0x90] sm:$0xff] %v238_v33  ;;  %v116_v55 = vmul.f32 %v380_v1, %v45_v43 }
  0x3c   :  { %303 = vst [vmem:[%s899_s3 + $0x98] sm:$0xff] %v239_v34  ;;  %304 = vst [vmem:[%s899_s3 + $0xa0] sm:$0xff] %v240_v39 }
  0x3d   :  { %305 = vst [vmem:[%s899_s3 + $0xa8] sm:$0xff] %v241_v40  ;;  %306 = vst [vmem:[%s899_s3 + $0xb0] sm:$0xff] %v242_v41  ;;  %v187_v5 = vadd.f32 %v385_v2, %v116_v55 }
  0x3e   :  { %307 = vst [vmem:[%s899_s3 + $0xb8] sm:$0xff] %v243_v44 }
  0x3f   :  { %v251_v14 = vmax.f32 %v187_v5, 0.0 }
  0x45   :  { %v46_v56 = vld [vmem:[%s896_s0 + $0x100] sm:$0xff]  ;;  %v47_v61 = vld [vmem:[%s896_s0 + $0x108] sm:$0xff]  ;;  %v48_v62 = vld [vmem:[%s896_s0 + $0x110] sm:$0xff] }
  0x46   :  { %v49_v63 = vld [vmem:[%s896_s0 + $0x118] sm:$0xff]  ;;  %v50_v6 = vld [vmem:[%s896_s0 + $0x120] sm:$0xff]  ;;  %v51_v7 = vld [vmem:[%s896_s0 + $0x128] sm:$0xff]  ;;  %v117_v12 = vmul.f32 %v380_v1, %v46_v56  ;;  %v118_v15 = vmul.f32 %v380_v1, %v47_v61  ;;  %v119_v16 = vmul.f32 %v380_v1, %v48_v62 }
  0x47   :  { %v52_v8 = vld [vmem:[%s896_s0 + $0x130] sm:$0xff]  ;;  %v120_v17 = vmul.f32 %v380_v1, %v49_v63  ;;  %v121_v19 = vmul.f32 %v380_v1, %v50_v6  ;;  %v122_v20 = vmul.f32 %v380_v1, %v51_v7 }
  0x48   :  { %308 = vst [vmem:[%s899_s3 + $0xc0] sm:$0xff] %v244_v57  ;;  %v188_v18 = vadd.f32 %v385_v2, %v117_v12  ;;  %v123_v21 = vmul.f32 %v380_v1, %v52_v8  ;;  %v189_v22 = vadd.f32 %v385_v2, %v118_v15  ;;  %v190_v23 = vadd.f32 %v385_v2, %v119_v16 }
  0x49   :  { %v191_v24 = vadd.f32 %v385_v2, %v120_v17  ;;  %v192_v28 = vadd.f32 %v385_v2, %v121_v19  ;;  %v193_v29 = vadd.f32 %v385_v2, %v122_v20 }
  0x4a   :  { %v252_v27 = vmax.f32 %v188_v18, 0.0  ;;  %v194_v30 = vadd.f32 %v385_v2, %v123_v21  ;;  %v253_v34 = vmax.f32 %v189_v22, 0.0  ;;  %v254_v35 = vmax.f32 %v190_v23, 0.0 }
  0x4b   :  { %v255_v36 = vmax.f32 %v191_v24, 0.0  ;;  %v256_v41 = vmax.f32 %v192_v28, 0.0  ;;  %v257_v42 = vmax.f32 %v193_v29, 0.0 }
  0x4c   :  { %v258_v43 = vmax.f32 %v194_v30, 0.0 }
  0x4f   :  { %v53_v13 = vld [vmem:[%s896_s0 + $0x138] sm:$0xff] }
  0x50   :  { %309 = vst [vmem:[%s899_s3 + $0xc8] sm:$0xff] %v245_v0  ;;  %310 = vst [vmem:[%s899_s3 + $0xd0] sm:$0xff] %v246_v3  ;;  %v124_v25 = vmul.f32 %v380_v1, %v53_v13 }
  0x51   :  { %311 = vst [vmem:[%s899_s3 + $0xd8] sm:$0xff] %v247_v4  ;;  %312 = vst [vmem:[%s899_s3 + $0xe0] sm:$0xff] %v248_v9 }
  0x52   :  { %313 = vst [vmem:[%s899_s3 + $0xe8] sm:$0xff] %v249_v10  ;;  %314 = vst [vmem:[%s899_s3 + $0xf0] sm:$0xff] %v250_v11  ;;  %v195_v37 = vadd.f32 %v385_v2, %v124_v25 }
  0x53   :  { %315 = vst [vmem:[%s899_s3 + $0xf8] sm:$0xff] %v251_v14 }
  0x54   :  { %v259_v46 = vmax.f32 %v195_v37, 0.0 }
  0x5a   :  { %v54_v26 = vld [vmem:[%s896_s0 + $0x140] sm:$0xff]  ;;  %v55_v31 = vld [vmem:[%s896_s0 + $0x148] sm:$0xff]  ;;  %v56_v32 = vld [vmem:[%s896_s0 + $0x150] sm:$0xff] }
  0x5b   :  { %v57_v33 = vld [vmem:[%s896_s0 + $0x158] sm:$0xff]  ;;  %v58_v38 = vld [vmem:[%s896_s0 + $0x160] sm:$0xff]  ;;  %v59_v39 = vld [vmem:[%s896_s0 + $0x168] sm:$0xff]  ;;  %v125_v44 = vmul.f32 %v380_v1, %v54_v26  ;;  %v126_v47 = vmul.f32 %v380_v1, %v55_v31  ;;  %v127_v48 = vmul.f32 %v380_v1, %v56_v32 }
  0x5c   :  { %v60_v40 = vld [vmem:[%s896_s0 + $0x170] sm:$0xff]  ;;  %v128_v49 = vmul.f32 %v380_v1, %v57_v33  ;;  %v129_v51 = vmul.f32 %v380_v1, %v58_v38  ;;  %v130_v52 = vmul.f32 %v380_v1, %v59_v39 }
  0x5d   :  { %316 = vst [vmem:[%s899_s3 + $0x100] sm:$0xff] %v252_v27  ;;  %v196_v50 = vadd.f32 %v385_v2, %v125_v44  ;;  %v131_v53 = vmul.f32 %v380_v1, %v60_v40  ;;  %v197_v54 = vadd.f32 %v385_v2, %v126_v47  ;;  %v198_v55 = vadd.f32 %v385_v2, %v127_v48 }
  0x5e   :  { %v199_v56 = vadd.f32 %v385_v2, %v128_v49  ;;  %v200_v60 = vadd.f32 %v385_v2, %v129_v51  ;;  %v201_v61 = vadd.f32 %v385_v2, %v130_v52 }
  0x5f   :  { %v260_v59 = vmax.f32 %v196_v50, 0.0  ;;  %v202_v62 = vadd.f32 %v385_v2, %v131_v53  ;;  %v261_v4 = vmax.f32 %v197_v54, 0.0  ;;  %v262_v5 = vmax.f32 %v198_v55, 0.0 }
  0x60   :  { %v263_v6 = vmax.f32 %v199_v56, 0.0  ;;  %v264_v11 = vmax.f32 %v200_v60, 0.0  ;;  %v265_v12 = vmax.f32 %v201_v61, 0.0 }
  0x61   :  { %v266_v13 = vmax.f32 %v202_v62, 0.0 }
  0x64   :  { %v61_v45 = vld [vmem:[%s896_s0 + $0x178] sm:$0xff] }
  0x65   :  { %317 = vst [vmem:[%s899_s3 + $0x108] sm:$0xff] %v253_v34  ;;  %318 = vst [vmem:[%s899_s3 + $0x110] sm:$0xff] %v254_v35  ;;  %v132_v57 = vmul.f32 %v380_v1, %v61_v45 }
  0x66   :  { %319 = vst [vmem:[%s899_s3 + $0x118] sm:$0xff] %v255_v36  ;;  %320 = vst [vmem:[%s899_s3 + $0x120] sm:$0xff] %v256_v41 }
  0x67   :  { %321 = vst [vmem:[%s899_s3 + $0x128] sm:$0xff] %v257_v42  ;;  %322 = vst [vmem:[%s899_s3 + $0x130] sm:$0xff] %v258_v43  ;;  %v203_v7 = vadd.f32 %v385_v2, %v132_v57 }
  0x68   :  { %323 = vst [vmem:[%s899_s3 + $0x138] sm:$0xff] %v259_v46 }
  0x69   :  { %v267_v16 = vmax.f32 %v203_v7, 0.0 }
  0x6f   :  { %v62_v58 = vld [vmem:[%s896_s0 + $0x180] sm:$0xff]  ;;  %v63_v63 = vld [vmem:[%s896_s0 + $0x188] sm:$0xff]  ;;  %v64_v0 = vld [vmem:[%s896_s0 + $0x190] sm:$0xff] }
  0x70   :  { %v65_v3 = vld [vmem:[%s896_s0 + $0x198] sm:$0xff]  ;;  %v66_v8 = vld [vmem:[%s896_s0 + $0x1a0] sm:$0xff]  ;;  %v67_v9 = vld [vmem:[%s896_s0 + $0x1a8] sm:$0xff]  ;;  %v133_v14 = vmul.f32 %v380_v1, %v62_v58  ;;  %v134_v17 = vmul.f32 %v380_v1, %v63_v63  ;;  %v135_v18 = vmul.f32 %v380_v1, %v64_v0 }
  0x71   :  { %v68_v10 = vld [vmem:[%s896_s0 + $0x1b0] sm:$0xff]  ;;  %v136_v19 = vmul.f32 %v380_v1, %v65_v3  ;;  %v137_v21 = vmul.f32 %v380_v1, %v66_v8  ;;  %v138_v22 = vmul.f32 %v380_v1, %v67_v9 }
  0x72   :  { %324 = vst [vmem:[%s899_s3 + $0x140] sm:$0xff] %v260_v59  ;;  %v204_v20 = vadd.f32 %v385_v2, %v133_v14  ;;  %v139_v23 = vmul.f32 %v380_v1, %v68_v10  ;;  %v205_v24 = vadd.f32 %v385_v2, %v134_v17  ;;  %v206_v25 = vadd.f32 %v385_v2, %v135_v18 }
  0x73   :  { %v207_v26 = vadd.f32 %v385_v2, %v136_v19  ;;  %v208_v30 = vadd.f32 %v385_v2, %v137_v21  ;;  %v209_v31 = vadd.f32 %v385_v2, %v138_v22 }
  0x74   :  { %v268_v29 = vmax.f32 %v204_v20, 0.0  ;;  %v210_v32 = vadd.f32 %v385_v2, %v139_v23  ;;  %v269_v36 = vmax.f32 %v205_v24, 0.0  ;;  %v270_v37 = vmax.f32 %v206_v25, 0.0 }
  0x75   :  { %v271_v38 = vmax.f32 %v207_v26, 0.0  ;;  %v272_v43 = vmax.f32 %v208_v30, 0.0  ;;  %v273_v44 = vmax.f32 %v209_v31, 0.0 }
  0x76   :  { %v274_v45 = vmax.f32 %v210_v32, 0.0 }
  0x79   :  { %v69_v15 = vld [vmem:[%s896_s0 + $0x1b8] sm:$0xff] }
  0x7a   :  { %325 = vst [vmem:[%s899_s3 + $0x148] sm:$0xff] %v261_v4  ;;  %326 = vst [vmem:[%s899_s3 + $0x150] sm:$0xff] %v262_v5  ;;  %v140_v27 = vmul.f32 %v380_v1, %v69_v15 }
  0x7b   :  { %327 = vst [vmem:[%s899_s3 + $0x158] sm:$0xff] %v263_v6  ;;  %328 = vst [vmem:[%s899_s3 + $0x160] sm:$0xff] %v264_v11 }
  0x7c   :  { %329 = vst [vmem:[%s899_s3 + $0x168] sm:$0xff] %v265_v12  ;;  %330 = vst [vmem:[%s899_s3 + $0x170] sm:$0xff] %v266_v13  ;;  %v211_v39 = vadd.f32 %v385_v2, %v140_v27 }
  0x7d   :  { %331 = vst [vmem:[%s899_s3 + $0x178] sm:$0xff] %v267_v16 }
  0x7e   :  { %v275_v48 = vmax.f32 %v211_v39, 0.0 }
  0x84   :  { %v70_v28 = vld [vmem:[%s896_s0 + $0x1c0] sm:$0xff]  ;;  %v71_v33 = vld [vmem:[%s896_s0 + $0x1c8] sm:$0xff]  ;;  %v72_v34 = vld [vmem:[%s896_s0 + $0x1d0] sm:$0xff] }
  0x85   :  { %v73_v35 = vld [vmem:[%s896_s0 + $0x1d8] sm:$0xff]  ;;  %v74_v40 = vld [vmem:[%s896_s0 + $0x1e0] sm:$0xff]  ;;  %v75_v41 = vld [vmem:[%s896_s0 + $0x1e8] sm:$0xff]  ;;  %v141_v46 = vmul.f32 %v380_v1, %v70_v28  ;;  %v142_v49 = vmul.f32 %v380_v1, %v71_v33  ;;  %v143_v50 = vmul.f32 %v380_v1, %v72_v34 }
  0x86   :  { %v76_v42 = vld [vmem:[%s896_s0 + $0x1f0] sm:$0xff]  ;;  %v144_v51 = vmul.f32 %v380_v1, %v73_v35  ;;  %v145_v53 = vmul.f32 %v380_v1, %v74_v40  ;;  %v146_v54 = vmul.f32 %v380_v1, %v75_v41 }
  0x87   :  { %332 = vst [vmem:[%s899_s3 + $0x180] sm:$0xff] %v268_v29  ;;  %v212_v52 = vadd.f32 %v385_v2, %v141_v46  ;;  %v147_v55 = vmul.f32 %v380_v1, %v76_v42  ;;  %v213_v56 = vadd.f32 %v385_v2, %v142_v49  ;;  %v214_v57 = vadd.f32 %v385_v2, %v143_v50 }
  0x88   :  { %v215_v58 = vadd.f32 %v385_v2, %v144_v51  ;;  %v216_v61 = vadd.f32 %v385_v2, %v145_v53  ;;  %v217_v62 = vadd.f32 %v385_v2, %v146_v54 }
  0x89   :  { %v276_v60 = vmax.f32 %v212_v52, 0.0  ;;  %v218_v63 = vadd.f32 %v385_v2, %v147_v55  ;;  %v277_v0 = vmax.f32 %v213_v56, 0.0  ;;  %v278_v3 = vmax.f32 %v214_v57, 0.0 }
  0x8a   :  { %v279_v4 = vmax.f32 %v215_v58, 0.0  ;;  %v280_v6 = vmax.f32 %v216_v61, 0.0  ;;  %v281_v7 = vmax.f32 %v217_v62, 0.0 }
  0x8b   :  { %v282_v8 = vmax.f32 %v218_v63, 0.0 }
  0x8e   :  { %v77_v47 = vld [vmem:[%s896_s0 + $0x1f8] sm:$0xff] }
  0x8f   :  { %333 = vst [vmem:[%s899_s3 + $0x188] sm:$0xff] %v269_v36  ;;  %334 = vst [vmem:[%s899_s3 + $0x190] sm:$0xff] %v270_v37  ;;  %v148_v59 = vmul.f32 %v380_v1, %v77_v47 }
  0x90   :  { %335 = vst [vmem:[%s899_s3 + $0x198] sm:$0xff] %v271_v38  ;;  %336 = vst [vmem:[%s899_s3 + $0x1a0] sm:$0xff] %v272_v43 }
  0x91   :  { %337 = vst [vmem:[%s899_s3 + $0x1a8] sm:$0xff] %v273_v44  ;;  %338 = vst [vmem:[%s899_s3 + $0x1b0] sm:$0xff] %v274_v45  ;;  %v219_v5 = vadd.f32 %v385_v2, %v148_v59 }
  0x92   :  { %339 = vst [vmem:[%s899_s3 + $0x1b8] sm:$0xff] %v275_v48  ;;  %340 = vst [vmem:[%s899_s3 + $0x1c0] sm:$0xff] %v276_v60 }
  0x93   :  { %341 = vst [vmem:[%s899_s3 + $0x1c8] sm:$0xff] %v277_v0  ;;  %342 = vst [vmem:[%s899_s3 + $0x1d0] sm:$0xff] %v278_v3  ;;  %v283_v1 = vmax.f32 %v219_v5, 0.0 }
  0x94   :  { %343 = vst [vmem:[%s899_s3 + $0x1d8] sm:$0xff] %v279_v4  ;;  %344 = vst [vmem:[%s899_s3 + $0x1e0] sm:$0xff] %v280_v6 }
  0x95   :  { %345 = vst [vmem:[%s899_s3 + $0x1e8] sm:$0xff] %v281_v7  ;;  %346 = vst [vmem:[%s899_s3 + $0x1f0] sm:$0xff] %v282_v8 }
  0x96   :  { %347 = vst [vmem:[%s899_s3 + $0x1f8] sm:$0xff] %v283_v1 }

// kernel: _conv_bn_relu_impl.2
= control target key start
LH: loop header
LB: loop body
LE: loop exit
PB: predicated region body
PF: predicated region fallthrough
CT: control target
= control target key end

     0   :  { %s2364_s12 = smov 0   ;;  %s2366_s13 = smov 0   ;;  %s3944_s0 = inlined_call_operand.vmem [shape: f32[2,18,18,4], index: 0, kind: input, shape index: {}]   ;;  %s3945_s1 = inlined_call_operand.vmem [shape: f32[36,128], index: 1, kind: input, shape index: {}]   ;;  %s3946_s2 = inlined_call_operand.vmem [shape: f32[512,128], index: 2, kind: output, shape index: {0}]   ;;  %s3947_s3 = inlined_call_operand.vmem [shape: f32[2,2,128], index: 3, kind: output, shape index: {1}]  }
   0x1   :  { %s2368_s14 = smov 0  }
   0x2 LB: > { %s26_s15 = sadd.s32 1, %s2329_s13  ;;  %p2109_p0 = scmp.ge.s32.totalorder %s2333_s14, 1  ;;  %s2333_s14 = sphi %s2368_s14, %s14_s14   ;;  %s2329_s13 = sphi %s2366_s13, %s4156_s13   ;;  %s2325_s12 = sphi %s2364_s12, %s4155_s12  }
   0x3   : > { %p28_p1 = scmp.ge.s32.totalorder %s26_s15, 2  ;;  %p154_p2 = scmp.lt.s32.totalorder %s2333_s14, 3 }
   0x5   : > { %s4158_s15 = smov (%p28_p1, %s26_s15), 0  ;;  %p155_p3 = pnand %p2109_p0, %p154_p2 }
   0x7   : > { %158 = sbr.rel (%p155_p3) target bundleno = 886 (0x376), region = 28 }
   0xe   : > { %p183_p4 = scmp.lt.s32.totalorder %s2325_s12, 1  ;;  %vm305_vm0 = vcmask 1046528   ;;  %s2335_s21 = smov 4   ;;  %vm386_vm1 = vcmask 1045504   ;;  %vm1627_vm2 = vcmask 1043456   ;;  %vm1261_vm3 = vcmask 31744  }
   0xf   : > { %s2336_s22 = smov 8   ;;  %s2337_s23 = smov 12   ;;  %vm1294_vm4 = vcmask 64512   ;;  %vm1327_vm5 = vcmask 97280   ;;  %vm1360_vm6 = vcmask 130048   ;;  %vm1393_vm7 = vcmask 162816  }
  0x10   : > { %s2386_s16 = scalar_select %p183_p4, %s2325_s12, 1  ;;  %vm1426_vm8 = vcmask 195584   ;;  %vm1459_vm9 = vcmask 228352   ;;  %vm1492_vm10 = vcmask 261120   ;;  %vm1530_vm11 = vcmask 293888  }
  0x11   : > { %s2338_s24 = smov 16   ;;  %s2339_s29 = smov 20   ;;  %vm2000_vm12 = vcmask 1040384  }
  0x12   : > { %s2258_s17 = smul.u32 432, %s2386_s16  ;;  %s2340_s7 = smov 24  }
  0x13   : > { %s2341_s10 = smov 28   ;;  %s2342_s11 = smov 32  }
  0x14   : > { %s2392_s20 = scalar_lea.vmem %s3944_s0, %s2258_s17  ;;  %s2111_s17 = sshll.u32 %s2325_s12, 5 }
  0x15   : > { %v2395_v0 = vld [vmem:[%s2392_s20 + $0x18] sm:$0xff]  ;;  %v2398_v1 = vld [vmem:[%s2392_s20 + $0x20] sm:$0xff]  ;;  %v2406_v5 = vld [vmem:[%s2392_s20 + $0x8] sm:$0xff]  ;;  %p190_p5 = scmp.lt.s32.totalorder %s2111_s17, 63 }
  0x16   : > { %v2401_v2 = vld [vmem:[%s2392_s20] sm:$0xff]  ;;  %v311_v3 = vrot.slane %v2395_v0, 1  ;;  %v312_v4 = vrot.slane %v2398_v1, 1  ;;  %v2410_v7 = vld [vmem:[%s2392_s20 + $0x28] sm:$0x3]  ;;  %v307_v8 = vrot.slane %v2406_v5, 1 }
  0x17   : > { %4037 = vst [vmem:[#allocation2_spill] sm:$0xff] %v2401_v2  ;;  %v306_v6 = vrot.slane %v2401_v2, 1  ;;  %v314_v9 = vrot.slane %v2410_v7, 1  ;;  %v2415_v10 = vld [vmem:[%s2392_s20 + $0x10] sm:$0x3]  ;;  %v2418_v11 = vld [vmem:[%s2392_s20 + $0x38] sm:$0xff] }
  0x18   : > { %v2421_v12 = vsel %vm305_vm0, %v311_v3, %v312_v4  ;;  %v309_v13 = vrot.slane %v2415_v10, 1  ;;  %v2425_v14 = vld [vmem:[%s2392_s20 + $0x40] sm:$0x3]  ;;  %v2428_v15 = vld [vmem:[%s2392_s20 + $0x30] sm:$0xff]  ;;  %v317_v18 = vrot.slane %v2418_v11, 1  ;;  %v2448_v24 = vld [vmem:[%s2392_s20 + $0x48] sm:$0xff] }
  0x19   : > { %497 = vrot.lane.b32.xlu1 %v2421_v12, %s2335_s21  ;;  %v308_v16 = vsel %vm305_vm0, %v306_v6, %v307_v8  ;;  %v2435_v17 = vsel %vm305_vm0, %v312_v4, %v314_v9  ;;  %v319_v19 = vrot.slane %v2425_v14, 1  ;;  %v316_v21 = vrot.slane %v2428_v15, 1  ;;  %v2442_v22 = vld [vmem:[%s2392_s20 + $0x50] sm:$0xff]  ;;  %v2445_v23 = vld [vmem:[%s2392_s20 + $0x58] sm:$0x3]  ;;  %v2463_v30 = vld [vmem:[%s2392_s20 + $0x68] sm:$0xff] }
  0x1a   : > { %493 = vrot.lane.b32.xlu0 %v308_v16, %s2335_s21  ;;  %v310_v20 = vsel %vm305_vm0, %v307_v8, %v309_v13  ;;  %v322_v26 = vrot.slane %v2442_v22, 1  ;;  %v324_v27 = vrot.slane %v2445_v23, 1  ;;  %v321_v29 = vrot.slane %v2448_v24, 1  ;;  %v2466_v31 = vld [vmem:[%s2392_s20 + $0x70] sm:$0x3]  ;;  %v2469_v32 = vld [vmem:[%s2392_s20 + $0x60] sm:$0xff] }
  0x1b   : > { %v2454_v25 = vsel %vm305_vm0, %v317_v18, %v319_v19  ;;  %v2459_v28 = vsel %vm305_vm0, %v316_v21, %v317_v18  ;;  %v327_v34 = vrot.slane %v2463_v30, 1  ;;  %v329_v35 = vrot.slane %v2466_v31, 1  ;;  %v2485_v38 = vld [vmem:[%s2392_s20 + $0x80] sm:$0xff]  ;;  %v2488_v39 = vld [vmem:[%s2392_s20 + $0x88] sm:$0x3]  ;;  %v2491_v40 = vld [vmem:[%s2392_s20 + $0x78] sm:$0xff] }
  0x1c   : > { %v2476_v33 = vsel %vm305_vm0, %v322_v26, %v324_v27  ;;  %v2481_v36 = vsel %vm305_vm0, %v321_v29, %v322_v26  ;;  %v326_v37 = vrot.slane %v2469_v32, 1  ;;  %v332_v42 = vrot.slane %v2485_v38, 1  ;;  %v2507_v46 = vld [vmem:[%s2392_s20 + $0x98] sm:$0xff]  ;;  %v2510_v47 = vld [vmem:[%s2392_s20 + $0xa0] sm:$0x3]  ;;  %v2513_v48 = vld [vmem:[%s2392_s20 + $0x90] sm:$0xff] }
  0x1d   : > { %499 = vrot.lane.b32.xlu1 %v2435_v17, %s2335_s21  ;;  %4038 = vst [vmem:[#allocation3_spill] sm:$0xff] %v2476_v33  ;;  %v2498_v41 = vsel %vm305_vm0, %v327_v34, %v329_v35  ;;  %v334_v43 = vrot.slane %v2488_v39, 1  ;;  %v331_v45 = vrot.slane %v2491_v40, 1  ;;  %v337_v50 = vrot.slane %v2507_v46, 1  ;;  %v2529_v54 = vld [vmem:[%s2392_s20 + $0xb0] sm:$0xff]  ;;  %v2535_v56 = vld [vmem:[%s2392_s20 + $0xa8] sm:$0xff] }
  0x1e   : > { %495 = vrot.lane.b32.xlu0 %v310_v20, %s2335_s21  ;;  %4039 = vst [vmem:[#allocation4_spill] sm:$0xff] %v2498_v41  ;;  %v2503_v44 = vsel %vm305_vm0, %v326_v37, %v327_v34  ;;  %v339_v51 = vrot.slane %v2510_v47, 1  ;;  %v336_v53 = vrot.slane %v2513_v48, 1  ;;  %v2532_v55 = vld [vmem:[%s2392_s20 + $0xb8] sm:$0x3]  ;;  %v342_v58 = vrot.slane %v2529_v54, 1 }
  0x1f   : > { %4040 = vst [vmem:[#allocation5_spill] sm:$0xff] %v2503_v44  ;;  %v2520_v49 = vsel %vm305_vm0, %v332_v42, %v334_v43  ;;  %v2525_v52 = vsel %vm305_vm0, %v331_v45, %v332_v42  ;;  %v344_v59 = vrot.slane %v2532_v55, 1  ;;  %v341_v61 = vrot.slane %v2535_v56, 1  ;;  %v2551_v62 = vld [vmem:[%s2392_s20 + $0xc8] sm:$0xff]  ;;  %v2554_v63 = vld [vmem:[%s2392_s20 + $0xd0] sm:$0x3] }
  0x20   : > { %4041 = vst [vmem:[#allocation6_spill] sm:$0xff] %v2520_v49  ;;  %4042 = vst [vmem:[#allocation7_spill] sm:$0xff] %v2525_v52  ;;  %v2542_v57 = vsel %vm305_vm0, %v337_v50, %v339_v51  ;;  %v2547_v60 = vsel %vm305_vm0, %v336_v53, %v337_v50  ;;  %v2557_v3 = vld [vmem:[%s2392_s20 + $0xc0] sm:$0xff]  ;;  %v347_v6 = vrot.slane %v2551_v62, 1  ;;  %v349_v8 = vrot.slane %v2554_v63, 1  ;;  %v2579_v19 = vld [vmem:[%s2392_s20 + $0xd8] sm:$0xff] }
  0x21   : > { %503 = vrot.lane.b32.xlu1 %v2454_v25, %s2335_s21  ;;  %4043 = vst [vmem:[#allocation8_spill] sm:$0xff] %v2542_v57  ;;  %4044 = vst [vmem:[#allocation9_spill] sm:$0xff] %v2547_v60  ;;  %v2564_v4 = vsel %vm305_vm0, %v342_v58, %v344_v59  ;;  %v2569_v9 = vsel %vm305_vm0, %v341_v61, %v342_v58  ;;  %v346_v13 = vrot.slane %v2557_v3, 1  ;;  %v2573_v16 = vld [vmem:[%s2392_s20 + $0xe0] sm:$0xff]  ;;  %v2576_v18 = vld [vmem:[%s2392_s20 + $0xe8] sm:$0x3] }
  0x22   : > { %501 = vrot.lane.b32.xlu0 %v2459_v28, %s2335_s21  ;;  %4045 = vst [vmem:[#allocation10_spill] sm:$0xff] %v2564_v4  ;;  %4046 = vst [vmem:[#allocation11_spill] sm:$0xff] %v2569_v9  ;;  %v2586_v20 = vsel %vm305_vm0, %v347_v6, %v349_v8  ;;  %v352_v21 = vrot.slane %v2573_v16, 1  ;;  %v354_v26 = vrot.slane %v2576_v18, 1  ;;  %v351_v29 = vrot.slane %v2579_v19, 1  ;;  %v2595_v34 = vld [vmem:[%s2392_s20 + $0xf8] sm:$0xff] }
  0x23   : > { %4047 = vst [vmem:[#allocation12_spill] sm:$0xff] %v2586_v20  ;;  %v2591_v27 = vsel %vm305_vm0, %v346_v13, %v347_v6  ;;  %v2598_v35 = vld [vmem:[%s2392_s20 + $0x100] sm:$0x3]  ;;  %v2601_v37 = vld [vmem:[%s2392_s20 + $0xf0] sm:$0xff]  ;;  %v357_v43 = vrot.slane %v2595_v34, 1  ;;  %v2623_v59 = vld [vmem:[%s2392_s20 + $0x108] sm:$0xff] }
  0x24   : > { %4048 = vst [vmem:[#allocation13_spill] sm:$0xff] %v2591_v27  ;;  %v2608_v42 = vsel %vm305_vm0, %v352_v21, %v354_v26  ;;  %v359_v45 = vrot.slane %v2598_v35, 1  ;;  %v2613_v50 = vsel %vm305_vm0, %v351_v29, %v352_v21  ;;  %v356_v51 = vrot.slane %v2601_v37, 1  ;;  %v2617_v53 = vld [vmem:[%s2392_s20 + $0x110] sm:$0xff]  ;;  %v2620_v58 = vld [vmem:[%s2392_s20 + $0x118] sm:$0x3] }
  0x25   : > { %507 = vrot.lane.b32.xlu1 %v2476_v33, %s2335_s21  ;;  %4049 = vst [vmem:[#allocation14_spill] sm:$0xff] %v2608_v42  ;;  %4050 = vst [vmem:[#allocation15_spill] sm:$0xff] %v2613_v50  ;;  %v362_v6 = vrot.slane %v2617_v53, 1  ;;  %v364_v8 = vrot.slane %v2620_v58, 1  ;;  %v361_v21 = vrot.slane %v2623_v59, 1  ;;  %v2639_v26 = vld [vmem:[%s2392_s20 + $0x128] sm:$0xff] }
  0x26   : > { %505 = vrot.lane.b32.xlu0 %v2481_v36, %s2335_s21  ;;  %v2630_v61 = vsel %vm305_vm0, %v357_v43, %v359_v45  ;;  %v2635_v13 = vsel %vm305_vm0, %v356_v51, %v357_v43  ;;  %v2642_v29 = vld [vmem:[%s2392_s20 + $0x130] sm:$0x3]  ;;  %v367_v43 = vrot.slane %v2639_v26, 1  ;;  %s4160_s17 = smov (!%p190_p5, %s2111_s17), 63 }
  0x27   : > { %4051 = vst [vmem:[#allocation16_spill] sm:$0xff] %v2630_v61  ;;  %4052 = vst [vmem:[#allocation17_spill] sm:$0xff] %v2635_v13  ;;  %v2652_v45 = vsel %vm305_vm0, %v362_v6, %v364_v8  ;;  %v369_v51 = vrot.slane %v2642_v29, 1  ;;  %s2112_s12 = sshll.u32 %s4160_s17, 3 }
  0x28   : > { %4053 = vst [vmem:[#allocation18_spill] sm:$0xff] %v2652_v45 }
  0x29   : > { %511 = vrot.lane.b32.xlu1 %v2498_v41, %s2335_s21  ;;  %v2674_v8 = vsel %vm305_vm0, %v367_v43, %v369_v51  ;;  %v2708_v41 = vld [vmem:[%s2392_s20 + $0x178] sm:$0x3] }
  0x2a   : > { %509 = vrot.lane.b32.xlu0 %v2503_v44, %s2335_s21  ;;  %4055 = vst [vmem:[#allocation20_spill] sm:$0xff] %v2674_v8 }
  0x2d   : > { %515 = vrot.lane.b32.xlu1 %v2520_v49, %s2335_s21 }
  0x2e   : > { %513 = vrot.lane.b32.xlu0 %v2525_v52, %s2335_s21  ;;  %v2705_v52 = vld [vmem:[%s2392_s20 + $0x170] sm:$0xff] }
  0x31   : > { %519 = vrot.lane.b32.xlu1 %v2542_v57, %s2335_s21  ;;  %v2683_v57 = vld [vmem:[%s2392_s20 + $0x158] sm:$0xff] }
  0x32   : > { %517 = vrot.lane.b32.xlu0 %v2547_v60, %s2335_s21 }
  0x35   : > { %523 = vrot.lane.b32.xlu1 %v2564_v4, %s2335_s21 }
  0x36   : > { %521 = vrot.lane.b32.xlu0 %v2569_v9, %s2335_s21 }
  0x39   : > { %527 = vrot.lane.b32.xlu1 %v2586_v20, %s2335_s21 }
  0x3a   : > { %525 = vrot.lane.b32.xlu0 %v2591_v27, %s2335_s21  ;;  %v2661_v27 = vld [vmem:[%s2392_s20 + $0x140] sm:$0xff] }
  0x3d   : > { %531 = vrot.lane.b32.xlu1 %v2608_v42, %s2335_s21  ;;  %v2645_v42 = vld [vmem:[%s2392_s20 + $0x120] sm:$0xff] }
  0x3e   : > { %529 = vrot.lane.b32.xlu0 %v2613_v50, %s2335_s21  ;;  %v2657_v50 = vsel %vm305_vm0, %v361_v21, %v362_v6  ;;  %v366_v20 = vrot.slane %v2645_v42, 1  ;;  %v372_v6 = vrot.slane %v2661_v27, 1 }
  0x3f   : > { %4054 = vst [vmem:[#allocation19_spill] sm:$0xff] %v2657_v50 }
  0x40   : > { %v2679_v4 = vsel %vm305_vm0, %v366_v20, %v367_v43  ;;  %v377_v20 = vrot.slane %v2683_v57, 1 }
  0x41   : > { %535 = vrot.lane.b32.xlu1 %v2630_v61, %s2335_s21  ;;  %v2664_v61 = vld [vmem:[%s2392_s20 + $0x148] sm:$0x3]  ;;  %4056 = vst [vmem:[#allocation21_spill] sm:$0xff] %v2679_v4 }
  0x42   : > { %533 = vrot.lane.b32.xlu0 %v2635_v13, %s2335_s21  ;;  %v2667_v13 = vld [vmem:[%s2392_s20 + $0x138] sm:$0xff]  ;;  %v374_v21 = vrot.slane %v2664_v61, 1 }
  0x43   : > { %v371_v9 = vrot.slane %v2667_v13, 1 }
  0x44   : > { %v2696_v51 = vsel %vm305_vm0, %v372_v6, %v374_v21 }
  0x45   : > { %539 = vrot.lane.b32.xlu1 %v2652_v45, %s2335_s21  ;;  %v2686_v45 = vld [vmem:[%s2392_s20 + $0x160] sm:$0x3]  ;;  %4057 = vst [vmem:[#allocation22_spill] sm:$0xff] %v2696_v51  ;;  %v2701_v60 = vsel %vm305_vm0, %v371_v9, %v372_v6  ;;  %v382_v9 = vrot.slane %v2705_v52, 1  ;;  %v384_v6 = vrot.slane %v2708_v41, 1 }
  0x46   : > { %537 = vrot.lane.b32.xlu0 %v2657_v50, %s2335_s21  ;;  %v2689_v50 = vld [vmem:[%s2392_s20 + $0x150] sm:$0xff]  ;;  %v379_v43 = vrot.slane %v2686_v45, 1  ;;  %4058 = vst [vmem:[#allocation23_spill] sm:$0xff] %v2701_v60 }
  0x47   : > { %v376_v49 = vrot.slane %v2689_v50, 1 }
  0x48   : > { %v2718_v21 = vsel %vm305_vm0, %v377_v20, %v379_v43  ;;  %v388_v43 = vrot.slane %v2406_v5, 2  ;;  %v395_v5 = vrot.slane %v2410_v7, 2  ;;  %v397_v7 = vrot.slane %v2428_v15, 2 }
  0x49   : > { %543 = vrot.lane.b32.xlu1 %v2674_v8, %s2335_s21  ;;  %v2711_v8 = vld [vmem:[%s2392_s20 + $0x168] sm:$0xff]  ;;  %4059 = vst [vmem:[#allocation24_spill] sm:$0xff] %v2718_v21 }
  0x4a   : > { %541 = vrot.lane.b32.xlu0 %v2679_v4, %s2335_s21  ;;  %v2723_v4 = vsel %vm305_vm0, %v376_v49, %v377_v20  ;;  %v381_v44 = vrot.slane %v2711_v8, 1  ;;  %v387_v49 = vrot.slane %v2401_v2, 2  ;;  %v430_v2 = vrot.slane %v2554_v63, 2 }
  0x4b   : > { %4060 = vst [vmem:[#allocation25_spill] sm:$0xff] %v2723_v4 }
  0x4c   : > { %v2736_v33 = vsel %vm305_vm0, %v381_v44, %v382_v9  ;;  %v392_v44 = vrot.slane %v2395_v0, 2 }
  0x4d   : > { %547 = vrot.lane.b32.xlu1 %v2696_v51, %s2335_s21  ;;  %v2731_v51 = vsel %vm305_vm0, %v382_v9, %v384_v6  ;;  %4062 = vst [vmem:[#allocation27_spill] sm:$0xff] %v2736_v33  ;;  %v393_v6 = vrot.slane %v2398_v1, 2 }
  0x4e   : > { %545 = vrot.lane.b32.xlu0 %v2701_v60, %s2335_s21  ;;  %4061 = vst [vmem:[#allocation26_spill] sm:$0xff] %v2731_v51  ;;  %v390_v60 = vrot.slane %v2415_v10, 2  ;;  %v389_v10 = vsel %vm386_vm1, %v387_v49, %v388_v43  ;;  %v403_v49 = vrot.slane %v2442_v22, 2 }
  0x4f   : > { %v2751_v9 = vsel %vm386_vm1, %v393_v6, %v395_v5 }
  0x50   : > { %v391_v20 = vsel %vm386_vm1, %v388_v43, %v390_v60  ;;  %v400_v60 = vrot.slane %v2425_v14, 2 }
  0x51   : > { %551 = vrot.lane.b32.xlu1 %v2718_v21, %s2335_s21  ;;  %v420_v21 = vrot.slane %v2510_v47, 2 }
  0x52   : > { %549 = vrot.lane.b32.xlu0 %v2723_v4, %s2335_s21  ;;  %v425_v4 = vrot.slane %v2532_v55, 2 }
  0x55   : > { %555 = vrot.lane.b32.xlu1 %v2731_v51, %s2335_s21  ;;  %v398_v51 = vrot.slane %v2418_v11, 2 }
  0x56   : > { %553 = vrot.lane.b32.xlu0 %v2736_v33, %s2335_s21  ;;  %v2756_v33 = vsel %vm386_vm1, %v392_v44, %v393_v6  ;;  %v402_v6 = vrot.slane %v2448_v24, 2  ;;  %v410_v44 = vrot.slane %v2466_v31, 2  ;;  %s3783_s21 = scalar_lea.vmem %s3946_s2, %s2112_s12 }
  0x57   : > { %v2764_v43 = vsel %vm386_vm1, %v398_v51, %v400_v60  ;;  %v2769_v14 = vsel %vm386_vm1, %v397_v7, %v398_v51  ;;  %v407_v51 = vrot.slane %v2469_v32, 2  ;;  %v413_v7 = vrot.slane %v2485_v38, 2 }
  0x59   : > { %591 = vrot.lane.b32.xlu1 %v391_v20, %s2336_s22  ;;  %v405_v20 = vrot.slane %v2445_v23, 2  ;;  %v2782_v23 = vsel %vm386_vm1, %v402_v6, %v403_v49 }
  0x5a   : > { %589 = vrot.lane.b32.xlu0 %v389_v10, %s2336_s22  ;;  %v408_v10 = vrot.slane %v2463_v30, 2 }
  0x5b   : > { %v2777_v5 = vsel %vm386_vm1, %v403_v49, %v405_v20  ;;  %v415_v20 = vrot.slane %v2488_v39, 2  ;;  %v412_v49 = vrot.slane %v2491_v40, 2 }
  0x5c   : > { %v2790_v60 = vsel %vm386_vm1, %v408_v10, %v410_v44  ;;  %v2795_v31 = vsel %vm386_vm1, %v407_v51, %v408_v10  ;;  %v418_v44 = vrot.slane %v2507_v46, 2  ;;  %v417_v10 = vrot.slane %v2513_v48, 2 }
  0x5d   : > { %595 = vrot.lane.b32.xlu1 %v2751_v9, %s2336_s22  ;;  %v2803_v6 = vsel %vm386_vm1, %v413_v7, %v415_v20  ;;  %v2808_v39 = vsel %vm386_vm1, %v412_v49, %v413_v7  ;;  %v423_v20 = vrot.slane %v2529_v54, 2  ;;  %v422_v7 = vrot.slane %v2535_v56, 2 }
  0x5e   : > { %593 = vrot.lane.b32.xlu0 %v2756_v33, %s2336_s22  ;;  %v2816_v51 = vsel %vm386_vm1, %v418_v44, %v420_v21  ;;  %v2821_v47 = vsel %vm386_vm1, %v417_v10, %v418_v44  ;;  %v428_v21 = vrot.slane %v2551_v62, 2  ;;  %v427_v44 = vrot.slane %v2557_v3, 2 }
  0x5f   : > { %4063 = vst [vmem:[#allocation28_spill] sm:$0xff] %v2816_v51  ;;  %v2829_v49 = vsel %vm386_vm1, %v423_v20, %v425_v4  ;;  %v2834_v55 = vsel %vm386_vm1, %v422_v7, %v423_v20  ;;  %v433_v4 = vrot.slane %v2573_v16, 2  ;;  %v432_v20 = vrot.slane %v2579_v19, 2 }
  0x60   : > { %4064 = vst [vmem:[#allocation29_spill] sm:$0xff] %v2829_v49  ;;  %4065 = vst [vmem:[#allocation30_spill] sm:$0xff] %v2834_v55  ;;  %v2842_v10 = vsel %vm386_vm1, %v428_v21, %v430_v2  ;;  %v2847_v63 = vsel %vm386_vm1, %v427_v44, %v428_v21  ;;  %v438_v2 = vrot.slane %v2595_v34, 2  ;;  %v437_v21 = vrot.slane %v2601_v37, 2 }
  0x61   : > { %599 = vrot.lane.b32.xlu1 %v2764_v43, %s2336_s22  ;;  %4066 = vst [vmem:[#allocation31_spill] sm:$0xff] %v2842_v10  ;;  %4067 = vst [vmem:[#allocation32_spill] sm:$0xff] %v2847_v63 }
  0x62   : > { %597 = vrot.lane.b32.xlu0 %v2769_v14, %s2336_s22 }
  0x65   : > { %603 = vrot.lane.b32.xlu1 %v2777_v5, %s2336_s22 }
  0x66   : > { %601 = vrot.lane.b32.xlu0 %v2782_v23, %s2336_s22 }
  0x69   : > { %607 = vrot.lane.b32.xlu1 %v2790_v60, %s2336_s22 }
  0x6a   : > { %605 = vrot.lane.b32.xlu0 %v2795_v31, %s2336_s22 }
  0x6d   : > { %611 = vrot.lane.b32.xlu1 %v2803_v6, %s2336_s22 }
  0x6e   : > { %609 = vrot.lane.b32.xlu0 %v2808_v39, %s2336_s22 }
  0x71   : > { %615 = vrot.lane.b32.xlu1 %v2816_v51, %s2336_s22  ;;  %v435_v51 = vrot.slane %v2576_v18, 2  ;;  %v2860_v18 = vsel %vm386_vm1, %v432_v20, %v433_v4 }
  0x72   : > { %613 = vrot.lane.b32.xlu0 %v2821_v47, %s2336_s22  ;;  %4069 = vst [vmem:[#allocation34_spill] sm:$0xff] %v2860_v18 }
  0x73   : > { %v2855_v7 = vsel %vm386_vm1, %v433_v4, %v435_v51  ;;  %v443_v51 = vrot.slane %v2617_v53, 2  ;;  %v442_v4 = vrot.slane %v2623_v59, 2 }
  0x74   : > { %4068 = vst [vmem:[#allocation33_spill] sm:$0xff] %v2855_v7 }
  0x75   : > { %619 = vrot.lane.b32.xlu1 %v2829_v49, %s2336_s22  ;;  %v440_v49 = vrot.slane %v2598_v35, 2  ;;  %v2873_v35 = vsel %vm386_vm1, %v437_v21, %v438_v2 }
  0x76   : > { %617 = vrot.lane.b32.xlu0 %v2834_v55, %s2336_s22  ;;  %4071 = vst [vmem:[#allocation36_spill] sm:$0xff] %v2873_v35 }
  0x77   : > { %v2868_v44 = vsel %vm386_vm1, %v438_v2, %v440_v49  ;;  %v448_v49 = vrot.slane %v2639_v26, 2  ;;  %v447_v2 = vrot.slane %v2645_v42, 2 }
  0x78   : > { %4070 = vst [vmem:[#allocation35_spill] sm:$0xff] %v2868_v44 }
  0x79   : > { %623 = vrot.lane.b32.xlu1 %v2842_v10, %s2336_s22  ;;  %v445_v10 = vrot.slane %v2620_v58, 2  ;;  %v2886_v58 = vsel %vm386_vm1, %v442_v4, %v443_v51 }
  0x7a   : > { %621 = vrot.lane.b32.xlu0 %v2847_v63, %s2336_s22  ;;  %4073 = vst [vmem:[#allocation38_spill] sm:$0xff] %v2886_v58 }
  0x7b   : > { %v2881_v20 = vsel %vm386_vm1, %v443_v51, %v445_v10  ;;  %v453_v10 = vrot.slane %v2661_v27, 2  ;;  %v452_v51 = vrot.slane %v2667_v13, 2 }
  0x7c   : > { %4072 = vst [vmem:[#allocation37_spill] sm:$0xff] %v2881_v20 }
  0x7d   : > { %627 = vrot.lane.b32.xlu1 %v2855_v7, %s2336_s22  ;;  %v450_v7 = vrot.slane %v2642_v29, 2  ;;  %v2899_v29 = vsel %vm386_vm1, %v447_v2, %v448_v49 }
  0x7e   : > { %625 = vrot.lane.b32.xlu0 %v2860_v18, %s2336_s22  ;;  %4075 = vst [vmem:[#allocation40_spill] sm:$0xff] %v2899_v29  ;;  %v1526_v18 = vld [vmem:[%s3945_s1 + $0x8] sm:$0xff] }
  0x7f   : > { %v2894_v21 = vsel %vm386_vm1, %v448_v49, %v450_v7  ;;  %v458_v7 = vrot.slane %v2683_v57, 2  ;;  %v457_v49 = vrot.slane %v2689_v50, 2 }
  0x80   : > { %4074 = vst [vmem:[#allocation39_spill] sm:$0xff] %v2894_v21 }
  0x81   : > { %631 = vrot.lane.b32.xlu1 %v2868_v44, %s2336_s22  ;;  %v455_v44 = vrot.slane %v2664_v61, 2  ;;  %v2914_v61 = vsel %vm386_vm1, %v452_v51, %v453_v10  ;;  %v462_v51 = vrot.slane %v2711_v8, 2 }
  0x82   : > { %629 = vrot.lane.b32.xlu0 %v2873_v35, %s2336_s22  ;;  %4078 = vst [vmem:[#allocation43_spill] sm:$0xff] %v2914_v61 }
  0x83   : > { %v2907_v4 = vsel %vm386_vm1, %v453_v10, %v455_v44  ;;  %v2931_v10 = vsel %vm386_vm1, %v457_v49, %v458_v7 }
  0x84   : > { %4076 = vst [vmem:[#allocation41_spill] sm:$0xff] %v2907_v4  ;;  %4082 = vst [vmem:[#allocation47_spill] sm:$0xff] %v2931_v10 }
  0x85   : > { %635 = vrot.lane.b32.xlu1 %v2881_v20, %s2336_s22  ;;  %v460_v20 = vrot.slane %v2686_v45, 2  ;;  %v463_v45 = vrot.slane %v2705_v52, 2 }
  0x86   : > { %633 = vrot.lane.b32.xlu0 %v2886_v58, %s2336_s22 }
  0x87   : > { %v2924_v44 = vsel %vm386_vm1, %v458_v7, %v460_v20 }
  0x88   : > { %4080 = vst [vmem:[#allocation45_spill] sm:$0xff] %v2924_v44 }
  0x89   : > { %639 = vrot.lane.b32.xlu1 %v2894_v21, %s2336_s22  ;;  %v465_v21 = vrot.slane %v2708_v41, 2  ;;  %v2946_v41 = vsel %vm386_vm1, %v462_v51, %v463_v45 }
  0x8a   : > { %637 = vrot.lane.b32.xlu0 %v2899_v29, %s2336_s22  ;;  %4086 = vst [vmem:[#allocation51_spill] sm:$0xff] %v2946_v41 }
  0x8b   : > { %v2911_v58 = vpop.permute.xlu1 %497  ;;  %v2941_v20 = vsel %vm386_vm1, %v463_v45, %v465_v21 }
  0x8c   : > { %4077 = vst [vmem:[#allocation42_spill] sm:$0xff] %v2911_v58  ;;  %v2917_v2 = vpop.permute.xlu0 %493  ;;  %4084 = vst [vmem:[#allocation49_spill] sm:$0xff] %v2941_v20 }
  0x8d   : > { %4079 = vst [vmem:[#allocation44_spill] sm:$0xff] %v2917_v2  ;;  %643 = vrot.lane.b32.xlu1 %v2907_v4, %s2336_s22 }
  0x8e   : > { %641 = vrot.lane.b32.xlu0 %v2914_v61, %s2336_s22 }
  0x8f   : > { %v2928_v29 = vpop.permute.xlu1 %499 }
  0x90   : > { %4081 = vst [vmem:[#allocation46_spill] sm:$0xff] %v2928_v29  ;;  %v2934_v35 = vpop.permute.xlu0 %495 }
  0x91   : > { %4083 = vst [vmem:[#allocation48_spill] sm:$0xff] %v2934_v35  ;;  %647 = vrot.lane.b32.xlu1 %v2924_v44, %s2336_s22  ;;  %v1528_v35 = vld [vmem:[%s3945_s1 + $0x18] sm:$0xff] }
  0x92   : > { %645 = vrot.lane.b32.xlu0 %v2931_v10, %s2336_s22 }
  0x93   : > { %v2943_v4 = vpop.permute.xlu1 %503 }
  0x94   : > { %4085 = vst [vmem:[#allocation50_spill] sm:$0xff] %v2943_v4  ;;  %v2948_v7 = vpop.permute.xlu0 %501 }
  0x95   : > { %4087 = vst [vmem:[#allocation52_spill] sm:$0xff] %v2948_v7  ;;  %651 = vrot.lane.b32.xlu1 %v2941_v20, %s2336_s22  ;;  %v1525_v7 = vld [vmem:[%s3945_s1] sm:$0xff] }
  0x96   : > { %649 = vrot.lane.b32.xlu0 %v2946_v41, %s2336_s22  ;;  %v2244_v29 = vpack.c.bf16 %v1526_v18, %v1525_v7 }
  0x97   : > { %v2954_v49 = vpop.permute.xlu1 %507 }
  0x98   : > { %4088 = vst [vmem:[#allocation53_spill] sm:$0xff] %v2954_v49  ;;  %v2956_v44 = vpop.permute.xlu0 %505  ;;  %2245 = vmatprep.subr.bf16.mxu0 %v2244_v29  ;;  %2252 = vmatprep.subr.bf16.mxu1 %v2244_v29 }
  0x99   : > { %4089 = vst [vmem:[#allocation54_spill] sm:$0xff] %v2956_v44  ;;  %687 = vrot.lane.b32.xlu1 %v2398_v1, %s2337_s23  ;;  %2247 = vmatpush3.bf16.msra.mxu0 %v2244_v29 }
  0x9a   : > { %685 = vrot.lane.b32.xlu0 %v2395_v0, %s2337_s23  ;;  %2255 = vmatpush3.bf16.msra.mxu1 %v2244_v29 }
  0x9b   : > { %v2962_v21 = vpop.permute.xlu1 %511 }
  0x9c   : > { %v2964_v45 = vpop.permute.xlu0 %509 }
  0x9d   : > { %691 = vrot.lane.b32.xlu1 %v2418_v11, %s2337_s23 }
  0x9e   : > { %689 = vrot.lane.b32.xlu0 %v2428_v15, %s2337_s23 }
  0x9f   : > { %v2970_v51 = vpop.permute.xlu1 %515 }
  0xa0   : > { %v2972_v20 = vpop.permute.xlu0 %513 }
  0xa1   : > { %695 = vrot.lane.b32.xlu1 %v2442_v22, %s2337_s23 }
  0xa2   : > { %693 = vrot.lane.b32.xlu0 %v2448_v24, %s2337_s23 }
  0xa3   : > { %v2978_v0 = vpop.permute.xlu1 %519 }
  0xa4   : > { %v2980_v1 = vpop.permute.xlu0 %517 }
  0xa5   : > { %699 = vrot.lane.b32.xlu1 %v2463_v30, %s2337_s23 }
  0xa6   : > { %697 = vrot.lane.b32.xlu0 %v2469_v32, %s2337_s23 }
  0xa7   : > { %v2986_v41 = vpop.permute.xlu1 %523 }
  0xa8   : > { %v2988_v10 = vpop.permute.xlu0 %521 }
  0xa9   : > { %703 = vrot.lane.b32.xlu1 %v2485_v38, %s2337_s23 }
  0xaa   : > { %701 = vrot.lane.b32.xlu0 %v2491_v40, %s2337_s23 }
  0xab   : > { %v2994_v61 = vpop.permute.xlu1 %527 }
  0xac   : > { %v2996_v49 = vpop.permute.xlu0 %525 }
  0xad   : > { %707 = vrot.lane.b32.xlu1 %v2507_v46, %s2337_s23 }
  0xae   : > { %705 = vrot.lane.b32.xlu0 %v2513_v48, %s2337_s23 }
  0xaf   : > { %v3002_v44 = vpop.permute.xlu1 %531 }
  0xb0   : > { %v3004_v4 = vpop.permute.xlu0 %529 }
  0xb1   : > { %781 = vrot.lane.b32.xlu1 %v2421_v12, %s2338_s24  ;;  %v1527_v12 = vld [vmem:[%s3945_s1 + $0x10] sm:$0xff] }
  0xb2   : > { %709 = vrot.lane.b32.xlu0 %v2535_v56, %s2337_s23  ;;  %v2248_v18 = vpack.c.bf16 %v1528_v35, %v1527_v12 }
  0xb3   : > { %v3016_v58 = vpop.permute.xlu1 %535 }
  0xb4   : > { %v3018_v63 = vpop.permute.xlu0 %533  ;;  %2249 = vmatprep.subr.bf16.mxu0 %v2248_v18  ;;  %2253 = vmatprep.subr.bf16.mxu1 %v2248_v18 }
  0xb5   : > { %877 = vrot.lane.b32.xlu1 %v2756_v33, %s2339_s29  ;;  %2251 = vmatpush3.bf16.msra.mxu0 %v2248_v18 }
  0xb6   : > { %783 = vrot.lane.b32.xlu0 %v2435_v17, %s2338_s24  ;;  %v1529_v17 = vld [vmem:[%s3945_s1 + $0x20] sm:$0xf]  ;;  %2256 = vmatpush3.bf16.msra.mxu1 %v2248_v18 }
  0xb7   : > { %v3030_v7 = vpop.permute.xlu1 %539  ;;  %2194 = vmatprep.subr.msk.mxu0 %vm1627_vm2, %v1529_v17  ;;  %2254 = vmatprep.subr.msk.mxu1 %vm1627_vm2, %v1529_v17 }
  0xb8   : > { %v3032_v2 = vpop.permute.xlu0 %537 }
  0xb9   : > { %973 = vrot.lane.b32.xlu1 %v2428_v15, %s2340_s7  ;;  %2195 = vmatpush3.msk.msra.mxu0 %vm1627_vm2, %v1529_v17 }
  0xba   : > { %879 = vrot.lane.b32.xlu0 %v2751_v9, %s2339_s29  ;;  %2257 = vmatpush3.msk.msra.mxu1 %vm1627_vm2, %v1529_v17 }
  0xbb   : > { %v3041_v33 = vpop.permute.xlu1 %543 }
  0xbc   : > { %v3043_v35 = vpop.permute.xlu0 %541 }
  0xbd   : > { %1069 = vrot.lane.b32.xlu1 %v2459_v28, %s2341_s10 }
  0xbe   : > { %975 = vrot.lane.b32.xlu0 %v2418_v11, %s2340_s7 }
  0xbf   : > { %v3049_v15 = vpop.permute.xlu1 %547 }
  0xc0   : > { %v3051_v9 = vpop.permute.xlu0 %545 }
  0xc1   : > { %1071 = vrot.lane.b32.xlu1 %v2454_v25, %s2341_s10 }
  0xc2   : > { %785 = vrot.lane.b32.xlu0 %v2459_v28, %s2338_s24 }
  0xc3   : > { %v3057_v29 = vpop.permute.xlu1 %551 }
  0xc4   : > { %v3059_v12 = vpop.permute.xlu0 %549 }
  0xc5   : > { %787 = vrot.lane.b32.xlu1 %v2454_v25, %s2338_s24 }
  0xc6   : > { %1165 = vrot.lane.b32.xlu0 %v2769_v14, %s2342_s11 }
  0xc7   : > { %v3065_v11 = vpop.permute.xlu1 %555 }
  0xc8   : > { %v3067_v18 = vpop.permute.xlu0 %553 }
  0xc9   : > { %1167 = vrot.lane.b32.xlu1 %v2764_v43, %s2342_s11 }
  0xca   : > { %881 = vrot.lane.b32.xlu0 %v2769_v14, %s2339_s29 }
  0xcb   : > { %v3073_v28 = vpop.permute.xlu1 %591 }
  0xcc   : > { %4090 = vst [vmem:[#allocation55_spill] sm:$0xff] %v3073_v28  ;;  %v3075_v17 = vpop.permute.xlu0 %589 }
  0xcd   : > { %4091 = vst [vmem:[#allocation56_spill] sm:$0xff] %v3075_v17  ;;  %977 = vrot.lane.b32.xlu1 %v2448_v24, %s2340_s7  ;;  %v4094_v17 = vld [vmem:[#allocation3_spill] sm:$0xff] }
  0xce   : > { %883 = vrot.lane.b32.xlu0 %v2764_v43, %s2339_s29 }
  0xcf   : > { %v3081_v25 = vpop.permute.xlu1 %595 }
  0xd0   : > { %v3083_v55 = vpop.permute.xlu0 %593 }
  0xd1   : > { %1073 = vrot.lane.b32.xlu1 %v2481_v36, %s2341_s10 }
  0xd2   : > { %979 = vrot.lane.b32.xlu0 %v2442_v22, %s2340_s7  ;;  %v1271_v22 = vsel %vm1261_vm3, %v2463_v30, %v2962_v21  ;;  %v1273_v21 = vsel %vm1261_vm3, %v2485_v38, %v2970_v51 }
  0xd3   : > { %v3089_v14 = vpop.permute.xlu1 %599 }
  0xd4   : > { %4092 = vst [vmem:[#allocation57_spill] sm:$0xff] %v3089_v14  ;;  %v3091_v28 = vpop.permute.xlu0 %597 }
  0xd5   : > { %4093 = vst [vmem:[#allocation58_spill] sm:$0xff] %v3091_v28  ;;  %1075 = vrot.lane.b32.xlu1 %v4094_v17, %s2341_s10 }
  0xd6   : > { %789 = vrot.lane.b32.xlu0 %v2481_v36, %s2338_s24  ;;  %v1270_v36 = vsel %vm1261_vm3, %v2469_v32, %v2964_v45  ;;  %v1272_v45 = vsel %vm1261_vm3, %v2491_v40, %v2972_v20  ;;  %v1274_v20 = vsel %vm1261_vm3, %v2513_v48, %v2980_v1  ;;  %v1276_v1 = vsel %vm1261_vm3, %v2535_v56, %v2988_v10 }
  0xd7   : > { %v3097_v24 = vpop.permute.xlu1 %603  ;;  %v1278_v10 = vsel %vm1261_vm3, %v2557_v3, %v2996_v49  ;;  %v1280_v49 = vsel %vm1261_vm3, %v2579_v19, %v3004_v4  ;;  %v1282_v4 = vsel %vm1261_vm3, %v2601_v37, %v3018_v63  ;;  %v1284_v37 = vsel %vm1261_vm3, %v2623_v59, %v3032_v2 }
  0xd8   : > { %4095 = vst [vmem:[#allocation3_spill] sm:$0xff] %v3097_v24  ;;  %v3099_v43 = vpop.permute.xlu0 %601  ;;  %v1286_v59 = vsel %vm1261_vm3, %v2645_v42, %v3043_v35  ;;  %v1288_v42 = vsel %vm1261_vm3, %v2667_v13, %v3051_v9  ;;  %v1290_v13 = vsel %vm1261_vm3, %v2689_v50, %v3059_v12  ;;  %v1292_v50 = vsel %vm1261_vm3, %v2711_v8, %v3067_v18 }
  0xd9   : > { %4096 = vst [vmem:[#allocation59_spill] sm:$0xff] %v3099_v43  ;;  %791 = vrot.lane.b32.xlu1 %v4094_v17, %s2338_s24 }
  0xda   : > { %1169 = vrot.lane.b32.xlu0 %v2782_v23, %s2342_s11 }
  0xdb   : > { %v608_v14 = vpop.permute.xlu1 %607 }
  0xdc   : > { %v3112_v24 = vsel %vm1294_vm4, %v1271_v22, %v608_v14  ;;  %v606_v43 = vpop.permute.xlu0 %605 }
  0xdd   : > { %v3115_v17 = vsel %vm1294_vm4, %v1270_v36, %v606_v43  ;;  %1171 = vrot.lane.b32.xlu1 %v2777_v5, %s2342_s11 }
  0xde   : > { %885 = vrot.lane.b32.xlu0 %v2782_v23, %s2339_s29  ;;  %v1275_v23 = vsel %vm1261_vm3, %v2507_v46, %v2978_v0 }
  0xdf   : > { %v612_v28 = vpop.permute.xlu1 %611 }
  0xe0   : > { %v3128_v14 = vsel %vm1294_vm4, %v1273_v21, %v612_v28  ;;  %v610_v43 = vpop.permute.xlu0 %609 }
  0xe1   : > { %v3131_v22 = vsel %vm1294_vm4, %v1272_v45, %v610_v43  ;;  %981 = vrot.lane.b32.xlu1 %v2469_v32, %s2340_s7  ;;  %v4097_v32 = vld [vmem:[#allocation5_spill] sm:$0xff] }
  0xe2   : > { %887 = vrot.lane.b32.xlu0 %v2777_v5, %s2339_s29  ;;  %v1277_v5 = vsel %vm1261_vm3, %v2529_v54, %v2986_v41 }
  0xe3   : > { %v616_v51 = vpop.permute.xlu1 %615 }
  0xe4   : > { %v3144_v28 = vsel %vm1294_vm4, %v1275_v23, %v616_v51  ;;  %v614_v36 = vpop.permute.xlu0 %613  ;;  %v4098_v51 = vld [vmem:[#allocation4_spill] sm:$0xff] }
  0xe5   : > { %v3147_v21 = vsel %vm1294_vm4, %v1274_v20, %v614_v36  ;;  %1077 = vrot.lane.b32.xlu1 %v4097_v32, %s2341_s10 }
  0xe6   : > { %983 = vrot.lane.b32.xlu0 %v2463_v30, %s2340_s7  ;;  %v1279_v30 = vsel %vm1261_vm3, %v2551_v62, %v2994_v61  ;;  %v1281_v61 = vsel %vm1261_vm3, %v2573_v16, %v3002_v44  ;;  %v1283_v44 = vsel %vm1261_vm3, %v2595_v34, %v3016_v58  ;;  %v1285_v34 = vsel %vm1261_vm3, %v2617_v53, %v3030_v7 }
  0xe7   : > { %v620_v0 = vpop.permute.xlu1 %619  ;;  %v1287_v53 = vsel %vm1261_vm3, %v2639_v26, %v3041_v33 }
  0xe8   : > { %v3160_v45 = vsel %vm1294_vm4, %v1277_v5, %v620_v0  ;;  %v618_v43 = vpop.permute.xlu0 %617 }
  0xe9   : > { %v3163_v23 = vsel %vm1294_vm4, %v1276_v1, %v618_v43  ;;  %1079 = vrot.lane.b32.xlu1 %v4098_v51, %s2341_s10 }
  0xea   : > { %793 = vrot.lane.b32.xlu0 %v4097_v32, %s2338_s24 }
  0xeb   : > { %v624_v41 = vpop.permute.xlu1 %623 }
  0xec   : > { %v3176_v20 = vsel %vm1294_vm4, %v1279_v30, %v624_v41  ;;  %v622_v36 = vpop.permute.xlu0 %621 }
  0xed   : > { %v3179_v5 = vsel %vm1294_vm4, %v1278_v10, %v622_v36  ;;  %795 = vrot.lane.b32.xlu1 %v4098_v51, %s2338_s24 }
  0xee   : > { %1173 = vrot.lane.b32.xlu0 %v2795_v31, %s2342_s11 }
  0xef   : > { %v628_v32 = vpop.permute.xlu1 %627 }
  0xf0   : > { %v3192_v0 = vsel %vm1294_vm4, %v1281_v61, %v628_v32  ;;  %v626_v1 = vpop.permute.xlu0 %625  ;;  %v4100_v32 = vld [vmem:[#allocation6_spill] sm:$0xff] }
  0xf1   : > { %v3195_v43 = vsel %vm1294_vm4, %v1280_v49, %v626_v1  ;;  %1175 = vrot.lane.b32.xlu1 %v2790_v60, %s2342_s11 }
  0xf2   : > { %889 = vrot.lane.b32.xlu0 %v2795_v31, %s2339_s29 }
  0xf3   : > { %v632_v51 = vpop.permute.xlu1 %631 }
  0xf4   : > { %v3208_v30 = vsel %vm1294_vm4, %v1283_v44, %v632_v51  ;;  %v630_v41 = vpop.permute.xlu0 %629 }
  0xf5   : > { %v3211_v10 = vsel %vm1294_vm4, %v1282_v4, %v630_v41  ;;  %985 = vrot.lane.b32.xlu1 %v2491_v40, %s2340_s7  ;;  %v4099_v40 = vld [vmem:[#allocation7_spill] sm:$0xff]  ;;  %v4102_v41 = vld [vmem:[#allocation8_spill] sm:$0xff] }
  0xf6   : > { %891 = vrot.lane.b32.xlu0 %v2790_v60, %s2339_s29 }
  0xf7   : > { %v636_v31 = vpop.permute.xlu1 %635 }
  0xf8   : > { %v3224_v63 = vsel %vm1294_vm4, %v1285_v34, %v636_v31  ;;  %v634_v58 = vpop.permute.xlu0 %633  ;;  %v4103_v31 = vld [vmem:[#allocation28_spill] sm:$0xff] }
  0xf9   : > { %v3227_v36 = vsel %vm1294_vm4, %v1284_v37, %v634_v58  ;;  %1081 = vrot.lane.b32.xlu1 %v4099_v40, %s2341_s10 }
  0xfa   : > { %987 = vrot.lane.b32.xlu0 %v2485_v38, %s2340_s7  ;;  %v1289_v38 = vsel %vm1261_vm3, %v2661_v27, %v3049_v15  ;;  %v1291_v27 = vsel %vm1261_vm3, %v2683_v57, %v3057_v29  ;;  %v1293_v57 = vsel %vm1261_vm3, %v2705_v52, %v3065_v11  ;;  %v4101_v11 = vld [vmem:[#allocation9_spill] sm:$0xff] }
  0xfb   : > { %v640_v60 = vpop.permute.xlu1 %639 }
  0xfc   : > { %v3240_v2 = vsel %vm1294_vm4, %v1287_v53, %v640_v60  ;;  %v638_v7 = vpop.permute.xlu0 %637  ;;  %v4104_v60 = vld [vmem:[#allocation11_spill] sm:$0xff] }
  0xfd   : > { %v3243_v61 = vsel %vm1294_vm4, %v1286_v59, %v638_v7  ;;  %1083 = vrot.lane.b32.xlu1 %v4100_v32, %s2341_s10 }
  0xfe   : > { %797 = vrot.lane.b32.xlu0 %v4099_v40, %s2338_s24 }
  0xff   : > { %v644_v26 = vpop.permute.xlu1 %643 }
 0x100   : > { %v3256_v33 = vsel %vm1294_vm4, %v1289_v38, %v644_v26  ;;  %v642_v35 = vpop.permute.xlu0 %641  ;;  %v4106_v38 = vld [vmem:[#allocation10_spill] sm:$0xff] }
 0x101   : > { %v3259_v49 = vsel %vm1294_vm4, %v1288_v42, %v642_v35  ;;  %799 = vrot.lane.b32.xlu1 %v4100_v32, %s2338_s24  ;;  %v4105_v32 = vld [vmem:[#allocation30_spill] sm:$0xff] }
 0x102   : > { %1177 = vrot.lane.b32.xlu0 %v2808_v39, %s2342_s11 }
 0x103   : > { %v648_v15 = vpop.permute.xlu1 %647 }
 0x104   : > { %v3272_v9 = vsel %vm1294_vm4, %v1291_v27, %v648_v15  ;;  %v646_v1 = vpop.permute.xlu0 %645  ;;  %v4108_v15 = vld [vmem:[#allocation44_spill] sm:$0xff] }
 0x105   : > { %v3275_v44 = vsel %vm1294_vm4, %v1290_v13, %v646_v1  ;;  %1179 = vrot.lane.b32.xlu1 %v2803_v6, %s2342_s11  ;;  %v4109_v13 = vld [vmem:[#allocation2_spill] sm:$0xff] }
 0x106   : > { %893 = vrot.lane.b32.xlu0 %v2808_v39, %s2339_s29  ;;  %v1262_v1 = vsel %vm1261_vm3, %v4109_v13, %v4108_v15 }
 0x107   : > { %v652_v29 = vpop.permute.xlu1 %651 }
 0x108   : > { %v3288_v12 = vsel %vm1294_vm4, %v1293_v57, %v652_v29  ;;  %v650_v51 = vpop.permute.xlu0 %649  ;;  %v4110_v57 = vld [vmem:[#allocation56_spill] sm:$0xff] }
 0x109   : > { %v3291_v4 = vsel %vm1294_vm4, %v1292_v50, %v650_v51  ;;  %989 = vrot.lane.b32.xlu1 %v2513_v48, %s2340_s7  ;;  %v1295_v29 = vsel %vm1294_vm4, %v1262_v1, %v4110_v57 }
 0x10a   : > { %895 = vrot.lane.b32.xlu0 %v2803_v6, %s2339_s29 }
 0x10b   : > { %v688_v39 = vpop.permute.xlu1 %687 }
 0x10c   : > { %v686_v52 = vpop.permute.xlu0 %685 }
 0x10d   : > { %1085 = vrot.lane.b32.xlu1 %v4101_v11, %s2341_s10  ;;  %v1328_v51 = vsel %vm1327_vm5, %v1295_v29, %v686_v52 }
 0x10e   : > { %991 = vrot.lane.b32.xlu0 %v2507_v46, %s2340_s7 }
 0x10f   : > { %v3301_v8 = vpop.permute.xlu1 %691 }
 0x110   : > { %v3303_v18 = vpop.permute.xlu0 %689 }
 0x111   : > { %1087 = vrot.lane.b32.xlu1 %v4102_v41, %s2341_s10 }
 0x112   : > { %801 = vrot.lane.b32.xlu0 %v4101_v11, %s2338_s24 }
 0x113   : > { %v3309_v48 = vpop.permute.xlu1 %695 }
 0x114   : > { %v3311_v6 = vpop.permute.xlu0 %693 }
 0x115   : > { %803 = vrot.lane.b32.xlu1 %v4102_v41, %s2338_s24  ;;  %v2292_v41 = vld [vmem:[%s2392_s20 + $0x8] sm:$0xff] }
 0x116   : > { %1181 = vrot.lane.b32.xlu0 %v2821_v47, %s2342_s11 }
 0x117   : > { %v3317_v46 = vpop.permute.xlu1 %699 }
 0x118   : > { %v3319_v34 = vpop.permute.xlu0 %697 }
 0x119   : > { %1183 = vrot.lane.b32.xlu1 %v4103_v31, %s2342_s11 }
 0x11a   : > { %897 = vrot.lane.b32.xlu0 %v2821_v47, %s2339_s29 }
 0x11b   : > { %v3325_v37 = vpop.permute.xlu1 %703 }
 0x11c   : > { %v3327_v58 = vpop.permute.xlu0 %701 }
 0x11d   : > { %993 = vrot.lane.b32.xlu1 %v2535_v56, %s2340_s7 }
 0x11e   : > { %899 = vrot.lane.b32.xlu0 %v4103_v31, %s2339_s29  ;;  %v4111_v31 = vld [vmem:[#allocation48_spill] sm:$0xff] }
 0x11f   : > { %v3333_v40 = vpop.permute.xlu1 %707 }
 0x120   : > { %v3335_v53 = vpop.permute.xlu0 %705 }
 0x121   : > { %1089 = vrot.lane.b32.xlu1 %v4104_v60, %s2341_s10 }
 0x122   : > { %995 = vrot.lane.b32.xlu0 %v2529_v54, %s2340_s7 }
 0x123   : > { %v782_v47 = vpop.permute.xlu1 %781 }
 0x124   : > { %v3341_v59 = vpop.permute.xlu0 %709 }
 0x125   : > { %805 = vrot.lane.b32.xlu1 %v4104_v60, %s2338_s24  ;;  %v1263_v60 = vsel %vm1261_vm3, %v2292_v41, %v4111_v31  ;;  %v4113_v41 = vld [vmem:[#allocation13_spill] sm:$0xff]  ;;  %v4114_v31 = vld [vmem:[#allocation32_spill] sm:$0xff] }
 0x126   : > { %711 = vrot.lane.b32.xlu0 %v2529_v54, %s2337_s23  ;;  %v4107_v54 = vld [vmem:[#allocation29_spill] sm:$0xff] }
 0x127   : > { %v878_v56 = vpop.permute.xlu1 %877 }
 0x128   : > { %v784_v7 = vpop.permute.xlu0 %783 }
 0x129   : > { %1185 = vrot.lane.b32.xlu1 %v4105_v32, %s2342_s11 }
 0x12a   : > { %1091 = vrot.lane.b32.xlu0 %v4106_v38, %s2341_s10 }
 0x12b   : > { %v974_v26 = vpop.permute.xlu1 %973 }
 0x12c   : > { %v880_v42 = vpop.permute.xlu0 %879 }
 0x12d   : > { %901 = vrot.lane.b32.xlu1 %v4105_v32, %s2339_s29  ;;  %v1361_v32 = vsel %vm1360_vm6, %v1328_v51, %v782_v47 }
 0x12e   : > { %807 = vrot.lane.b32.xlu0 %v4106_v38, %s2338_s24  ;;  %v4112_v38 = vld [vmem:[#allocation55_spill] sm:$0xff]  ;;  %v1394_v15 = vsel %vm1393_vm7, %v1361_v32, %v878_v56 }
 0x12f   : > { %v1070_v35 = vpop.permute.xlu1 %1069  ;;  %v1427_v13 = vsel %vm1426_vm8, %v1394_v15, %v974_v26 }
 0x130   : > { %v976_v27 = vpop.permute.xlu0 %975  ;;  %v1460_v57 = vsel %vm1459_vm9, %v1427_v13, %v1070_v35 }
 0x131   : > { %903 = vrot.lane.b32.xlu1 %v4107_v54, %s2339_s29 }
 0x132   : > { %1187 = vrot.lane.b32.xlu0 %v4107_v54, %s2342_s11  ;;  %v1296_v54 = vsel %vm1294_vm4, %v1263_v60, %v4112_v38  ;;  %v2293_v38 = vld [vmem:[%s2392_s20 + $0x18] sm:$0xff] }
 0x133   : > { %v1072_v50 = vpop.permute.xlu1 %1071  ;;  %v1329_v52 = vsel %vm1327_vm5, %v1296_v54, %v688_v39  ;;  %v4116_v54 = vld [vmem:[#allocation42_spill] sm:$0xff] }
 0x134   : > { %v786_v11 = vpop.permute.xlu0 %785  ;;  %v1362_v47 = vsel %vm1360_vm6, %v1329_v52, %v784_v7  ;;  %v1264_v15 = vsel %vm1261_vm3, %v2293_v38, %v4116_v54 }
 0x135   : > { %713 = vrot.lane.b32.xlu1 %v2557_v3, %s2337_s23  ;;  %v1395_v51 = vsel %vm1393_vm7, %v1362_v47, %v880_v42 }
 0x136   : > { %997 = vrot.lane.b32.xlu0 %v2557_v3, %s2340_s7  ;;  %v1428_v3 = vsel %vm1426_vm8, %v1395_v51, %v976_v27 }
 0x137   : > { %v788_v1 = vpop.permute.xlu1 %787  ;;  %v1461_v39 = vsel %vm1459_vm9, %v1428_v3, %v1072_v50  ;;  %v4115_v50 = vld [vmem:[#allocation12_spill] sm:$0xff] }
 0x138   : > { %v1166_v29 = vpop.permute.xlu0 %1165 }
 0x139   : > { %1093 = vrot.lane.b32.xlu1 %v4113_v41, %s2341_s10  ;;  %v1493_v56 = vsel %vm1492_vm10, %v1460_v57, %v1166_v29  ;;  %v2294_v57 = vld [vmem:[%s2392_s20 + $0x20] sm:$0xff] }
 0x13a   : > { %999 = vrot.lane.b32.xlu0 %v2551_v62, %s2340_s7  ;;  %2196 = vmatprep.mubr.msk.f32.mxu0 %vm1530_vm11, %v1493_v56  ;;  %v4117_v29 = vld [vmem:[#allocation46_spill] sm:$0xff]  ;;  %v4118_v56 = vld [vmem:[#allocation31_spill] sm:$0xff] }
 0x13b   : > { %v1168_v7 = vpop.permute.xlu1 %1167  ;;  %v1265_v51 = vsel %vm1261_vm3, %v2294_v57, %v4117_v29  ;;  %v4122_v57 = vld [vmem:[#allocation14_spill] sm:$0xff] }
 0x13c   : > { %v1494_v26 = vsel %vm1492_vm10, %v1461_v39, %v1168_v7  ;;  %v882_v35 = vpop.permute.xlu0 %881  ;;  %v1298_v3 = vsel %vm1294_vm4, %v1265_v51, %v3081_v25  ;;  %v4123_v29 = vld [vmem:[#allocation58_spill] sm:$0xff] }
 0x13d   : > { %809 = vrot.lane.b32.xlu1 %v4113_v41, %s2338_s24  ;;  %2197 = vmatmul.mubr.msk.f32.vlgmr.msra.gmra.mrb[0].mxu0 %vm1530_vm11, %v1494_v26 }
 0x13e   : > { %715 = vrot.lane.b32.xlu0 %v2551_v62, %s2337_s23  ;;  %v1297_v62 = vsel %vm1294_vm4, %v1264_v15, %v3083_v55  ;;  %v1331_v55 = vsel %vm1327_vm5, %v1298_v3, %v3301_v8  ;;  %v4120_v15 = vld [vmem:[#allocation34_spill] sm:$0xff]  ;;  %v2296_v3 = vld [vmem:[%s2392_s20 + $0x38] sm:$0xff] }
 0x13f   : > { %v978_v42 = vpop.permute.xlu1 %977  ;;  %v1330_v13 = vsel %vm1327_vm5, %v1297_v62, %v3303_v18  ;;  %v1364_v26 = vsel %vm1360_vm6, %v1331_v55, %v788_v1  ;;  %v2295_v62 = vld [vmem:[%s2392_s20 + $0x30] sm:$0xff] }
 0x140   : > { %v884_v27 = vpop.permute.xlu0 %883  ;;  %v1363_v41 = vsel %vm1360_vm6, %v1330_v13, %v786_v11 }
 0x141   : > { %1189 = vrot.lane.b32.xlu1 %v4114_v31, %s2342_s11  ;;  %v1396_v39 = vsel %vm1393_vm7, %v1363_v41, %v882_v35 }
 0x142   : > { %1095 = vrot.lane.b32.xlu0 %v4115_v50, %s2341_s10  ;;  %v1429_v18 = vsel %vm1426_vm8, %v1396_v39, %v978_v42  ;;  %v4124_v39 = vld [vmem:[#allocation50_spill] sm:$0xff] }
 0x143   : > { %v1074_v60 = vpop.permute.xlu1 %1073  ;;  %v1267_v55 = vsel %vm1261_vm3, %v2296_v3, %v4124_v39 }
 0x144   : > { %v980_v32 = vpop.permute.xlu0 %979  ;;  %v1462_v11 = vsel %vm1459_vm9, %v1429_v18, %v1074_v60 }
 0x145   : > { %905 = vrot.lane.b32.xlu1 %v4114_v31, %s2339_s29 }
 0x146   : > { %811 = vrot.lane.b32.xlu0 %v4115_v50, %s2338_s24  ;;  %v1397_v50 = vsel %vm1393_vm7, %v1364_v26, %v884_v27  ;;  %v4119_v27 = vld [vmem:[#allocation15_spill] sm:$0xff]  ;;  %v4125_v26 = vld [vmem:[#allocation57_spill] sm:$0xff] }
 0x147   : > { %v1076_v52 = vpop.permute.xlu1 %1075  ;;  %v1430_v35 = vsel %vm1426_vm8, %v1397_v50, %v980_v32 }
 0x148   : > { %v790_v47 = vpop.permute.xlu0 %789  ;;  %v1463_v8 = vsel %vm1459_vm9, %v1430_v35, %v1076_v52  ;;  %v4121_v52 = vld [vmem:[#allocation52_spill] sm:$0xff] }
 0x149   : > { %907 = vrot.lane.b32.xlu1 %v4118_v56, %s2339_s29  ;;  %v1266_v13 = vsel %vm1261_vm3, %v2295_v62, %v4121_v52  ;;  %v4127_v62 = vld [vmem:[#allocation17_spill] sm:$0xff] }
 0x14a   : > { %1191 = vrot.lane.b32.xlu0 %v4118_v56, %s2342_s11  ;;  %v1299_v51 = vsel %vm1294_vm4, %v1266_v13, %v4123_v29  ;;  %v2298_v52 = vld [vmem:[%s2392_s20 + $0xf8] sm:$0xff]  ;;  %v2299_v29 = vld [vmem:[%s2392_s20 + $0x48] sm:$0xff] }
 0x14b   : > { %v792_v7 = vpop.permute.xlu1 %791  ;;  %v1332_v56 = vsel %vm1327_vm5, %v1299_v51, %v3311_v6  ;;  %v4128_v51 = vld [vmem:[#allocation54_spill] sm:$0xff] }
 0x14c   : > { %v1170_v31 = vpop.permute.xlu0 %1169  ;;  %v1365_v18 = vsel %vm1360_vm6, %v1332_v56, %v790_v47  ;;  %v4129_v56 = vld [vmem:[#allocation59_spill] sm:$0xff] }
 0x14d   : > { %v1495_v25 = vsel %vm1492_vm10, %v1462_v11, %v1170_v31  ;;  %717 = vrot.lane.b32.xlu1 %v2579_v19, %s2337_s23  ;;  %v1300_v11 = vsel %vm1294_vm4, %v1267_v55, %v4125_v26  ;;  %v2300_v26 = vld [vmem:[%s2392_s20 + $0x50] sm:$0xff] }
 0x14e   : > { %1001 = vrot.lane.b32.xlu0 %v2579_v19, %s2340_s7  ;;  %2199 = vmatprep.mubr.msk.f32.mxu0 %vm1530_vm11, %v1495_v25  ;;  %v1333_v6 = vsel %vm1327_vm5, %v1300_v11, %v3309_v48  ;;  %v4130_v11 = vld [vmem:[#allocation53_spill] sm:$0xff] }
 0x14f   : > { %v1172_v1 = vpop.permute.xlu1 %1171  ;;  %v1366_v47 = vsel %vm1360_vm6, %v1333_v6, %v792_v7 }
 0x150   : > { %v1496_v42 = vsel %vm1492_vm10, %v1463_v8, %v1172_v1  ;;  %v886_v60 = vpop.permute.xlu0 %885 }
 0x151   : > { %1097 = vrot.lane.b32.xlu1 %v4119_v27, %s2341_s10  ;;  %2200 = vmatmul.mubr.msk.f32.gmra.mrb[2].mxu0 %vm1530_vm11, %v1496_v42  ;;  %v1398_v31 = vsel %vm1393_vm7, %v1365_v18, %v886_v60  ;;  %v4126_v60 = vld [vmem:[#allocation33_spill] sm:$0xff] }
 0x152   : > { %1003 = vrot.lane.b32.xlu0 %v2573_v16, %s2340_s7 }
 0x153   : > { %v982_v32 = vpop.permute.xlu1 %981 }
 0x154   : > { %v888_v19 = vpop.permute.xlu0 %887  ;;  %v1431_v50 = vsel %vm1426_vm8, %v1398_v31, %v982_v32  ;;  %v1269_v31 = vsel %vm1261_vm3, %v2300_v26, %v4130_v11  ;;  %v1337_v11 = vsel %vm1327_vm5, %v3112_v24, %v3325_v37 }
 0x155   : > { %813 = vrot.lane.b32.xlu1 %v4119_v27, %s2338_s24  ;;  %v1399_v1 = vsel %vm1393_vm7, %v1366_v47, %v888_v19  ;;  %v4132_v47 = vld [vmem:[#allocation3_spill] sm:$0xff] }
 0x156   : > { %719 = vrot.lane.b32.xlu0 %v2573_v16, %s2337_s23 }
 0x157   : > { %v1078_v38 = vpop.permute.xlu1 %1077 }
 0x158   : > { %v984_v54 = vpop.permute.xlu0 %983  ;;  %v1464_v35 = vsel %vm1459_vm9, %v1431_v50, %v1078_v38  ;;  %v2297_v38 = vld [vmem:[%s2392_s20 + $0xf0] sm:$0xff] }
 0x159   : > { %1193 = vrot.lane.b32.xlu1 %v4120_v15, %s2342_s11  ;;  %v1432_v27 = vsel %vm1426_vm8, %v1399_v1, %v984_v54  ;;  %v4131_v50 = vld [vmem:[#allocation36_spill] sm:$0xff] }
 0x15a   : > { %1099 = vrot.lane.b32.xlu0 %v4122_v57, %s2341_s10  ;;  %v4133_v1 = vld [vmem:[#allocation16_spill] sm:$0xff] }
 0x15b   : > { %v1080_v41 = vpop.permute.xlu1 %1079 }
 0x15c   : > { %v794_v16 = vpop.permute.xlu0 %793  ;;  %v1465_v48 = vsel %vm1459_vm9, %v1432_v27, %v1080_v41  ;;  %v1268_v41 = vsel %vm1261_vm3, %v2299_v29, %v4128_v51  ;;  %v4135_v51 = vld [vmem:[#allocation19_spill] sm:$0xff] }
 0x15d   : > { %909 = vrot.lane.b32.xlu1 %v4120_v15, %s2339_s29  ;;  %v1301_v3 = vsel %vm1294_vm4, %v1268_v41, %v4129_v56  ;;  %v2302_v41 = vld [vmem:[%s2392_s20 + $0x110] sm:$0xff] }
 0x15e   : > { %815 = vrot.lane.b32.xlu0 %v4122_v57, %s2338_s24  ;;  %v1334_v55 = vsel %vm1327_vm5, %v1301_v3, %v3319_v34  ;;  %v1336_v3 = vsel %vm1327_vm5, %v3115_v17, %v3327_v58 }
 0x15f   : > { %v796_v25 = vpop.permute.xlu1 %795  ;;  %v1367_v6 = vsel %vm1360_vm6, %v1334_v55, %v794_v16 }
 0x160   : > { %v1174_v8 = vpop.permute.xlu0 %1173 }
 0x161   : > { %v1497_v42 = vsel %vm1492_vm10, %v1464_v35, %v1174_v8  ;;  %911 = vrot.lane.b32.xlu1 %v4126_v60, %s2339_s29  ;;  %v1302_v35 = vsel %vm1294_vm4, %v1269_v31, %v4132_v47 }
 0x162   : > { %1195 = vrot.lane.b32.xlu0 %v4126_v60, %s2342_s11  ;;  %2202 = vmatprep.mubr.msk.f32.mxu0 %vm1530_vm11, %v1497_v42  ;;  %v1335_v34 = vsel %vm1327_vm5, %v1302_v35, %v3317_v46  ;;  %v4136_v35 = vld [vmem:[#allocation38_spill] sm:$0xff] }
 0x163   : > { %v1176_v7 = vpop.permute.xlu1 %1175  ;;  %v1368_v27 = vsel %vm1360_vm6, %v1335_v34, %v796_v25 }
 0x164   : > { %v1498_v32 = vsel %vm1492_vm10, %v1465_v48, %v1176_v7  ;;  %v890_v19 = vpop.permute.xlu0 %889 }
 0x165   : > { %721 = vrot.lane.b32.xlu1 %v2297_v38, %s2337_s23  ;;  %2203 = vmatmul.mubr.msk.f32.gmra.mrb[4].mxu0 %vm1530_vm11, %v1498_v32  ;;  %v1400_v8 = vsel %vm1393_vm7, %v1367_v6, %v890_v19 }
 0x166   : > { %1005 = vrot.lane.b32.xlu0 %v2297_v38, %s2340_s7 }
 0x167   : > { %v986_v54 = vpop.permute.xlu1 %985 }
 0x168   : > { %v892_v15 = vpop.permute.xlu0 %891  ;;  %v1433_v42 = vsel %vm1426_vm8, %v1400_v8, %v986_v54 }
 0x169   : > { %1101 = vrot.lane.b32.xlu1 %v4127_v62, %s2341_s10  ;;  %v1401_v7 = vsel %vm1393_vm7, %v1368_v27, %v892_v15  ;;  %v4134_v15 = vld [vmem:[#allocation35_spill] sm:$0xff] }
 0x16a   : > { %1007 = vrot.lane.b32.xlu0 %v2298_v52, %s2340_s7 }
 0x16b   : > { %v1082_v13 = vpop.permute.xlu1 %1081 }
 0x16c   : > { %v988_v57 = vpop.permute.xlu0 %987  ;;  %v1466_v16 = vsel %vm1459_vm9, %v1433_v42, %v1082_v13  ;;  %v2301_v13 = vld [vmem:[%s2392_s20 + $0x108] sm:$0xff] }
 0x16d   : > { %817 = vrot.lane.b32.xlu1 %v4127_v62, %s2338_s24  ;;  %v1434_v19 = vsel %vm1426_vm8, %v1401_v7, %v988_v57 }
 0x16e   : > { %723 = vrot.lane.b32.xlu0 %v2298_v52, %s2337_s23 }
 0x16f   : > { %v1084_v39 = vpop.permute.xlu1 %1083 }
 0x170   : > { %v798_v18 = vpop.permute.xlu0 %797  ;;  %v1467_v46 = vsel %vm1459_vm9, %v1434_v19, %v1084_v39  ;;  %v1338_v19 = vsel %vm1327_vm5, %v3131_v22, %v3335_v53 }
 0x171   : > { %1197 = vrot.lane.b32.xlu1 %v4131_v50, %s2342_s11  ;;  %v1369_v55 = vsel %vm1360_vm6, %v1336_v3, %v798_v18  ;;  %v4140_v3 = vld [vmem:[#allocation40_spill] sm:$0xff] }
 0x172   : > { %1103 = vrot.lane.b32.xlu0 %v4133_v1, %s2341_s10 }
 0x173   : > { %v800_v60 = vpop.permute.xlu1 %799 }
 0x174   : > { %v1178_v48 = vpop.permute.xlu0 %1177 }
 0x175   : > { %v1499_v32 = vsel %vm1492_vm10, %v1466_v16, %v1178_v48  ;;  %913 = vrot.lane.b32.xlu1 %v4131_v50, %s2339_s29  ;;  %v1370_v50 = vsel %vm1360_vm6, %v1337_v11, %v800_v60  ;;  %v4138_v16 = vld [vmem:[#allocation37_spill] sm:$0xff] }
 0x176   : > { %819 = vrot.lane.b32.xlu0 %v4133_v1, %s2338_s24  ;;  %2205 = vmatprep.mubr.msk.f32.mxu0 %vm1530_vm11, %v1499_v32  ;;  %v4137_v1 = vld [vmem:[#allocation18_spill] sm:$0xff] }
 0x177   : > { %v1180_v25 = vpop.permute.xlu1 %1179  ;;  %v2303_v32 = vld [vmem:[%s2392_s20 + $0x120] sm:$0xff] }
 0x178   : > { %v1500_v38 = vsel %vm1492_vm10, %v1467_v46, %v1180_v25  ;;  %v894_v54 = vpop.permute.xlu0 %893 }
 0x179   : > { %915 = vrot.lane.b32.xlu1 %v4134_v15, %s2339_s29  ;;  %2206 = vmatmul.mubr.msk.f32.gmra.mrb[6].mxu0 %vm1530_vm11, %v1500_v38  ;;  %v1402_v26 = vsel %vm1393_vm7, %v1369_v55, %v894_v54  ;;  %v4141_v55 = vld [vmem:[#allocation20_spill] sm:$0xff] }
 0x17a   : > { %1199 = vrot.lane.b32.xlu0 %v4134_v15, %s2342_s11  ;;  %v4139_v15 = vld [vmem:[#allocation21_spill] sm:$0xff] }
 0x17b   : > { %v990_v62 = vpop.permute.xlu1 %989 }
 0x17c   : > { %v896_v52 = vpop.permute.xlu0 %895  ;;  %v1435_v31 = vsel %vm1426_vm8, %v1402_v26, %v990_v62 }
 0x17d   : > { %725 = vrot.lane.b32.xlu1 %v2301_v13, %s2337_s23  ;;  %v1403_v18 = vsel %vm1393_vm7, %v1370_v50, %v896_v52  ;;  %v2304_v52 = vld [vmem:[%s2392_s20 + $0x128] sm:$0xff] }
 0x17e   : > { %1009 = vrot.lane.b32.xlu0 %v2301_v13, %s2340_s7 }
 0x17f   : > { %v1086_v57 = vpop.permute.xlu1 %1085 }
 0x180   : > { %v992_v29 = vpop.permute.xlu0 %991  ;;  %v1468_v17 = vsel %vm1459_vm9, %v1435_v31, %v1086_v57 }
 0x181   : > { %1105 = vrot.lane.b32.xlu1 %v4135_v51, %s2341_s10  ;;  %v1436_v8 = vsel %vm1426_vm8, %v1403_v18, %v992_v29 }
 0x182   : > { %1011 = vrot.lane.b32.xlu0 %v2302_v41, %s2340_s7 }
 0x183   : > { %v1088_v56 = vpop.permute.xlu1 %1087 }
 0x184   : > { %v802_v39 = vpop.permute.xlu0 %801  ;;  %v1469_v24 = vsel %vm1459_vm9, %v1436_v8, %v1088_v56 }
 0x185   : > { %821 = vrot.lane.b32.xlu1 %v4135_v51, %s2338_s24  ;;  %v1371_v25 = vsel %vm1360_vm6, %v1338_v19, %v802_v39  ;;  %v1339_v51 = vsel %vm1327_vm5, %v3128_v14, %v3333_v40 }
 0x186   : > { %727 = vrot.lane.b32.xlu0 %v2302_v41, %s2337_s23 }
 0x187   : > { %v804_v6 = vpop.permute.xlu1 %803 }
 0x188   : > { %v1182_v58 = vpop.permute.xlu0 %1181  ;;  %v1372_v56 = vsel %vm1360_vm6, %v1339_v51, %v804_v6  ;;  %v2307_v51 = vld [vmem:[%s2392_s20 + $0x150] sm:$0xff] }
 0x189   : > { %v1501_v47 = vsel %vm1492_vm10, %v1468_v17, %v1182_v58  ;;  %1201 = vrot.lane.b32.xlu1 %v4136_v35, %s2342_s11  ;;  %v4142_v17 = vld [vmem:[#allocation39_spill] sm:$0xff] }
 0x18a   : > { %1107 = vrot.lane.b32.xlu0 %v4137_v1, %s2341_s10  ;;  %2208 = vmatprep.mubr.msk.f32.mxu0 %vm1530_vm11, %v1501_v47  ;;  %v2305_v47 = vld [vmem:[%s2392_s20 + $0x138] sm:$0xff] }
 0x18b   : > { %v1184_v37 = vpop.permute.xlu1 %1183 }
 0x18c   : > { %v1502_v34 = vsel %vm1492_vm10, %v1469_v24, %v1184_v37  ;;  %v898_v42 = vpop.permute.xlu0 %897 }
 0x18d   : > { %917 = vrot.lane.b32.xlu1 %v4136_v35, %s2339_s29  ;;  %2209 = vmatmul.mubr.msk.f32.gmra.mrb[8].mxu0 %vm1530_vm11, %v1502_v34  ;;  %v1404_v54 = vsel %vm1393_vm7, %v1371_v25, %v898_v42  ;;  %v1340_v35 = vsel %vm1327_vm5, %v3147_v21, %v3341_v59  ;;  %v4143_v34 = vld [vmem:[#allocation23_spill] sm:$0xff] }
 0x18e   : > { %823 = vrot.lane.b32.xlu0 %v4137_v1, %s2338_s24 }
 0x18f   : > { %v994_v60 = vpop.permute.xlu1 %993 }
 0x190   : > { %v900_v27 = vpop.permute.xlu0 %899  ;;  %v1437_v62 = vsel %vm1426_vm8, %v1404_v54, %v994_v60  ;;  %v2306_v60 = vld [vmem:[%s2392_s20 + $0x140] sm:$0xff] }
 0x191   : > { %919 = vrot.lane.b32.xlu1 %v4138_v16, %s2339_s29  ;;  %v1405_v39 = vsel %vm1393_vm7, %v1372_v56, %v900_v27  ;;  %v4145_v54 = vld [vmem:[#allocation22_spill] sm:$0xff] }
 0x192   : > { %1203 = vrot.lane.b32.xlu0 %v4138_v16, %s2342_s11 }
 0x193   : > { %v1090_v48 = vpop.permute.xlu1 %1089 }
 0x194   : > { %v996_v7 = vpop.permute.xlu0 %995  ;;  %v1470_v13 = vsel %vm1459_vm9, %v1437_v62, %v1090_v48 }
 0x195   : > { %729 = vrot.lane.b32.xlu1 %v2303_v32, %s2337_s23  ;;  %v1438_v26 = vsel %vm1426_vm8, %v1405_v39, %v996_v7 }
 0x196   : > { %1013 = vrot.lane.b32.xlu0 %v2303_v32, %s2340_s7 }
 0x197   : > { %v806_v46 = vpop.permute.xlu1 %805 }
 0x198   : > { %v712_v38 = vpop.permute.xlu0 %711  ;;  %v1373_v1 = vsel %vm1360_vm6, %v1340_v35, %v806_v46  ;;  %v4144_v46 = vld [vmem:[#allocation43_spill] sm:$0xff] }
 0x199   : > { %1109 = vrot.lane.b32.xlu1 %v4139_v15, %s2341_s10  ;;  %v1341_v7 = vsel %vm1327_vm5, %v3144_v28, %v712_v38 }
 0x19a   : > { %1015 = vrot.lane.b32.xlu0 %v2304_v52, %s2340_s7 }
 0x19b   : > { %v1186_v57 = vpop.permute.xlu1 %1185 }
 0x19c   : > { %v1503_v29 = vsel %vm1492_vm10, %v1470_v13, %v1186_v57  ;;  %v1092_v22 = vpop.permute.xlu0 %1091 }
 0x19d   : > { %825 = vrot.lane.b32.xlu1 %v4139_v15, %s2338_s24  ;;  %2211 = vmatprep.mubr.msk.f32.mxu0 %vm1530_vm11, %v1503_v29  ;;  %v1471_v31 = vsel %vm1459_vm9, %v1438_v26, %v1092_v22  ;;  %v4146_v29 = vld [vmem:[#allocation41_spill] sm:$0xff] }
 0x19e   : > { %731 = vrot.lane.b32.xlu0 %v2304_v52, %s2337_s23  ;;  %v4147_v26 = vld [vmem:[#allocation25_spill] sm:$0xff] }
 0x19f   : > { %v902_v53 = vpop.permute.xlu1 %901 }
 0x1a0   : > { %v808_v41 = vpop.permute.xlu0 %807  ;;  %v1406_v37 = vsel %vm1393_vm7, %v1373_v1, %v902_v53 }
 0x1a1   : > { %1205 = vrot.lane.b32.xlu1 %v4140_v3, %s2342_s11  ;;  %v1374_v19 = vsel %vm1360_vm6, %v1341_v7, %v808_v41 }
 0x1a2   : > { %1111 = vrot.lane.b32.xlu0 %v4141_v55, %s2341_s10 }
 0x1a3   : > { %v904_v11 = vpop.permute.xlu1 %903 }
 0x1a4   : > { %v1188_v50 = vpop.permute.xlu0 %1187  ;;  %v1407_v25 = vsel %vm1393_vm7, %v1374_v19, %v904_v11 }
 0x1a5   : > { %v1504_v14 = vsel %vm1492_vm10, %v1471_v31, %v1188_v50  ;;  %921 = vrot.lane.b32.xlu1 %v4140_v3, %s2339_s29  ;;  %v2308_v31 = vld [vmem:[%s2392_s20 + $0x158] sm:$0xff] }
 0x1a6   : > { %827 = vrot.lane.b32.xlu0 %v4141_v55, %s2338_s24  ;;  %2212 = vmatmul.mubr.msk.f32.gmra.mrb[10].mxu0 %vm1530_vm11, %v1504_v14 }
 0x1a7   : > { %v714_v40 = vpop.permute.xlu1 %713 }
 0x1a8   : > { %v998_v6 = vpop.permute.xlu0 %997  ;;  %v1342_v41 = vsel %vm1327_vm5, %v3163_v23, %v714_v40 }
 0x1a9   : > { %923 = vrot.lane.b32.xlu1 %v4142_v17, %s2339_s29  ;;  %v1439_v42 = vsel %vm1426_vm8, %v1406_v37, %v998_v6 }
 0x1aa   : > { %1207 = vrot.lane.b32.xlu0 %v4142_v17, %s2342_s11 }
 0x1ab   : > { %v1094_v58 = vpop.permute.xlu1 %1093 }
 0x1ac   : > { %v1000_v18 = vpop.permute.xlu0 %999  ;;  %v1472_v27 = vsel %vm1459_vm9, %v1439_v42, %v1094_v58 }
 0x1ad   : > { %733 = vrot.lane.b32.xlu1 %v2305_v47, %s2337_s23  ;;  %v1440_v15 = vsel %vm1426_vm8, %v1407_v25, %v1000_v18  ;;  %v4151_v25 = vld [vmem:[#allocation27_spill] sm:$0xff] }
 0x1ae   : > { %1017 = vrot.lane.b32.xlu0 %v2305_v47, %s2340_s7  ;;  %v4148_v47 = vld [vmem:[#allocation47_spill] sm:$0xff] }
 0x1af   : > { %v810_v8 = vpop.permute.xlu1 %809 }
 0x1b0   : > { %v716_v24 = vpop.permute.xlu0 %715  ;;  %v1375_v3 = vsel %vm1360_vm6, %v1342_v41, %v810_v8  ;;  %v4149_v8 = vld [vmem:[#allocation24_spill] sm:$0xff] }
 0x1b1   : > { %1113 = vrot.lane.b32.xlu1 %v4143_v34, %s2341_s10  ;;  %v1343_v17 = vsel %vm1327_vm5, %v3160_v45, %v716_v24 }
 0x1b2   : > { %1019 = vrot.lane.b32.xlu0 %v2306_v60, %s2340_s7 }
 0x1b3   : > { %v1190_v16 = vpop.permute.xlu1 %1189 }
 0x1b4   : > { %v1505_v48 = vsel %vm1492_vm10, %v1472_v27, %v1190_v16  ;;  %v1096_v21 = vpop.permute.xlu0 %1095  ;;  %v4150_v27 = vld [vmem:[#allocation45_spill] sm:$0xff] }
 0x1b5   : > { %829 = vrot.lane.b32.xlu1 %v4143_v34, %s2338_s24  ;;  %2214 = vmatprep.mubr.msk.f32.mxu0 %vm1530_vm11, %v1505_v48  ;;  %v1473_v52 = vsel %vm1459_vm9, %v1440_v15, %v1096_v21  ;;  %v2309_v21 = vld [vmem:[%s2392_s20 + $0x168] sm:$0xff]  ;;  %v2310_v15 = vld [vmem:[%s2392_s20 + $0x170] sm:$0xff] }
 0x1b6   : > { %735 = vrot.lane.b32.xlu0 %v2306_v60, %s2337_s23 }
 0x1b7   : > { %v906_v59 = vpop.permute.xlu1 %905 }
 0x1b8   : > { %v812_v32 = vpop.permute.xlu0 %811  ;;  %v1408_v55 = vsel %vm1393_vm7, %v1375_v3, %v906_v59 }
 0x1b9   : > { %1209 = vrot.lane.b32.xlu1 %v4144_v46, %s2342_s11  ;;  %v1376_v18 = vsel %vm1360_vm6, %v1343_v17, %v812_v32 }
 0x1ba   : > { %1115 = vrot.lane.b32.xlu0 %v4145_v54, %s2341_s10 }
 0x1bb   : > { %v908_v62 = vpop.permute.xlu1 %907 }
 0x1bc   : > { %v1192_v13 = vpop.permute.xlu0 %1191  ;;  %v1409_v35 = vsel %vm1393_vm7, %v1376_v18, %v908_v62 }
 0x1bd   : > { %v1506_v28 = vsel %vm1492_vm10, %v1473_v52, %v1192_v13  ;;  %925 = vrot.lane.b32.xlu1 %v4144_v46, %s2339_s29 }
 0x1be   : > { %831 = vrot.lane.b32.xlu0 %v4145_v54, %s2338_s24  ;;  %2215 = vmatmul.mubr.msk.f32.gmra.mrb[12].mxu0 %vm1530_vm11, %v1506_v28 }
 0x1bf   : > { %v718_v38 = vpop.permute.xlu1 %717 }
 0x1c0   : > { %v1002_v57 = vpop.permute.xlu0 %1001  ;;  %v1344_v59 = vsel %vm1327_vm5, %v3179_v5, %v718_v38 }
 0x1c1   : > { %927 = vrot.lane.b32.xlu1 %v4146_v29, %s2339_s29  ;;  %v1441_v11 = vsel %vm1426_vm8, %v1408_v55, %v1002_v57 }
 0x1c2   : > { %1211 = vrot.lane.b32.xlu0 %v4146_v29, %s2342_s11 }
 0x1c3   : > { %v1098_v22 = vpop.permute.xlu1 %1097 }
 0x1c4   : > { %v1004_v53 = vpop.permute.xlu0 %1003  ;;  %v1474_v50 = vsel %vm1459_vm9, %v1441_v11, %v1098_v22  ;;  %v4152_v22 = vld [vmem:[#allocation51_spill] sm:$0xff] }
 0x1c5   : > { %737 = vrot.lane.b32.xlu1 %v2307_v51, %s2337_s23  ;;  %v1442_v1 = vsel %vm1426_vm8, %v1409_v35, %v1004_v53  ;;  %v252_v11 = vld [vmem:[%s2392_s20 + $0x188] sm:$0xff] }
 0x1c6   : > { %1021 = vrot.lane.b32.xlu0 %v2307_v51, %s2340_s7  ;;  %v4153_v51 = vld [vmem:[#allocation26_spill] sm:$0xff] }
 0x1c7   : > { %v814_v56 = vpop.permute.xlu1 %813 }
 0x1c8   : > { %v720_v39 = vpop.permute.xlu0 %719  ;;  %v1377_v32 = vsel %vm1360_vm6, %v1344_v59, %v814_v56 }
 0x1c9   : > { %1117 = vrot.lane.b32.xlu1 %v4147_v26, %s2341_s10  ;;  %v1345_v38 = vsel %vm1327_vm5, %v3176_v20, %v720_v39 }
 0x1ca   : > { %1023 = vrot.lane.b32.xlu0 %v2308_v31, %s2340_s7 }
 0x1cb   : > { %v1194_v14 = vpop.permute.xlu1 %1193 }
 0x1cc   : > { %v1507_v6 = vsel %vm1492_vm10, %v1474_v50, %v1194_v14  ;;  %v1100_v23 = vpop.permute.xlu0 %1099  ;;  %v4154_v50 = vld [vmem:[#allocation49_spill] sm:$0xff] }
 0x1cd   : > { %833 = vrot.lane.b32.xlu1 %v4147_v26, %s2338_s24  ;;  %2217 = vmatprep.mubr.msk.f32.mxu0 %vm1530_vm11, %v1507_v6  ;;  %v1475_v34 = vsel %vm1459_vm9, %v1442_v1, %v1100_v23  ;;  %v251_v26 = vld [vmem:[%s2392_s20 + $0x180] sm:$0xff]  ;;  %v471_v6 = vrot.slane %v252_v11, 1 }
 0x1ce   : > { %739 = vrot.lane.b32.xlu0 %v2308_v31, %s2337_s23  ;;  %v470_v14 = vrot.slane %v251_v26, 1 }
 0x1cf   : > { %v910_v40 = vpop.permute.xlu1 %909 }
 0x1d0   : > { %v816_v58 = vpop.permute.xlu0 %815  ;;  %v1410_v46 = vsel %vm1393_vm7, %v1377_v32, %v910_v40  ;;  %v472_v17 = vsel %vm305_vm0, %v470_v14, %v471_v6 }
 0x1d1   : > { %1213 = vrot.lane.b32.xlu1 %v4148_v47, %s2342_s11  ;;  %v1378_v29 = vsel %vm1360_vm6, %v1345_v38, %v816_v58 }
 0x1d2   : > { %1119 = vrot.lane.b32.xlu0 %v4149_v8, %s2341_s10 }
 0x1d3   : > { %v912_v37 = vpop.permute.xlu1 %911 }
 0x1d4   : > { %v1196_v42 = vpop.permute.xlu0 %1195  ;;  %v1411_v53 = vsel %vm1393_vm7, %v1378_v29, %v912_v37 }
 0x1d5   : > { %v1508_v45 = vsel %vm1492_vm10, %v1475_v34, %v1196_v42  ;;  %929 = vrot.lane.b32.xlu1 %v4148_v47, %s2339_s29  ;;  %v475_v34 = vrot.slane %v251_v26, 2  ;;  %v476_v42 = vrot.slane %v252_v11, 2 }
 0x1d6   : > { %835 = vrot.lane.b32.xlu0 %v4149_v8, %s2338_s24  ;;  %2218 = vmatmul.mubr.msk.f32.gmra.mrb[14].mxu0 %vm1530_vm11, %v1508_v45  ;;  %v253_v8 = vld [vmem:[%s2392_s20 + $0x190] sm:$0x3] }
 0x1d7   : > { %v722_v24 = vpop.permute.xlu1 %721 }
 0x1d8   : > { %v1006_v60 = vpop.permute.xlu0 %1005  ;;  %v1346_v58 = vsel %vm1327_vm5, %v3195_v43, %v722_v24  ;;  %v473_v24 = vrot.slane %v253_v8, 1 }
 0x1d9   : > { %931 = vrot.lane.b32.xlu1 %v4150_v27, %s2339_s29  ;;  %v1443_v54 = vsel %vm1426_vm8, %v1410_v46, %v1006_v60 }
 0x1da   : > { %1215 = vrot.lane.b32.xlu0 %v4150_v27, %s2342_s11 }
 0x1db   : > { %v1102_v16 = vpop.permute.xlu1 %1101 }
 0x1dc   : > { %v1008_v48 = vpop.permute.xlu0 %1007  ;;  %v1476_v62 = vsel %vm1459_vm9, %v1443_v54, %v1102_v16  ;;  %v477_v16 = vsel %vm386_vm1, %v475_v34, %v476_v42 }
 0x1dd   : > { %741 = vrot.lane.b32.xlu1 %v2309_v21, %s2337_s23  ;;  %v1444_v41 = vsel %vm1426_vm8, %v1411_v53, %v1008_v48 }
 0x1de   : > { %1025 = vrot.lane.b32.xlu0 %v2309_v21, %s2340_s7  ;;  %v474_v21 = vsel %vm305_vm0, %v471_v6, %v473_v24 }
 0x1df   : > { %v818_v7 = vpop.permute.xlu1 %817 }
 0x1e0   : > { %v3694_v19 = vpop.permute.xlu0 %723  ;;  %v1379_v47 = vsel %vm1360_vm6, %v1346_v58, %v818_v7 }
 0x1e1   : > { %1121 = vrot.lane.b32.xlu1 %v4151_v25, %s2341_s10  ;;  %v1347_v59 = vsel %vm1327_vm5, %v3192_v0, %v3694_v19 }
 0x1e2   : > { %1027 = vrot.lane.b32.xlu0 %v2310_v15, %s2340_s7 }
 0x1e3   : > { %v1198_v52 = vpop.permute.xlu1 %1197 }
 0x1e4   : > { %v1104_v13 = vpop.permute.xlu0 %1103  ;;  %v1509_v5 = vsel %vm1492_vm10, %v1476_v62, %v1198_v52 }
 0x1e5   : > { %837 = vrot.lane.b32.xlu1 %v4151_v25, %s2338_s24  ;;  %2220 = vmatprep.mubr.msk.f32.mxu1 %vm1530_vm11, %v1509_v5  ;;  %v1477_v3 = vsel %vm1459_vm9, %v1444_v41, %v1104_v13  ;;  %v478_v25 = vrot.slane %v253_v8, 2  ;;  %v255_v5 = vld [vmem:[%s2392_s20 + $0x1a0] sm:$0xff] }
 0x1e6   : > { %743 = vrot.lane.b32.xlu0 %v2310_v15, %s2337_s23  ;;  %v484_v29 = vrot.slane %v255_v5, 1 }
 0x1e7   : > { %v914_v28 = vpop.permute.xlu1 %913  ;;  %v479_v52 = vsel %vm386_vm1, %v476_v42, %v478_v25 }
 0x1e8   : > { %v820_v57 = vpop.permute.xlu0 %819  ;;  %v1412_v1 = vsel %vm1393_vm7, %v1379_v47, %v914_v28  ;;  %v256_v28 = vld [vmem:[%s2392_s20 + $0x1a8] sm:$0x3] }
 0x1e9   : > { %1217 = vrot.lane.b32.xlu1 %v4152_v22, %s2342_s11  ;;  %v1380_v32 = vsel %vm1360_vm6, %v1347_v59, %v820_v57  ;;  %v254_v57 = vld [vmem:[%s2392_s20 + $0x198] sm:$0xff]  ;;  %s2113_s20 = sshll.u32 %s2386_s16, 1 }
 0x1ea   : > { %1123 = vrot.lane.b32.xlu0 %v4153_v51, %s2341_s10 }
 0x1eb   : > { %v916_v56 = vpop.permute.xlu1 %915 }
 0x1ec   : > { %v1200_v55 = vpop.permute.xlu0 %1199  ;;  %v1413_v46 = vsel %vm1393_vm7, %v1380_v32, %v916_v56  ;;  %v489_v56 = vrot.slane %v255_v5, 2 }
 0x1ed   : > { %v1510_v20 = vsel %vm1492_vm10, %v1477_v3, %v1200_v55  ;;  %933 = vrot.lane.b32.xlu1 %v4152_v22, %s2339_s29  ;;  %v486_v22 = vrot.slane %v256_v28, 1  ;;  %v491_v55 = vrot.slane %v256_v28, 2 }
 0x1ee   : > { %839 = vrot.lane.b32.xlu0 %v4153_v51, %s2338_s24  ;;  %2221 = vmatmul.mubr.msk.f32.vlgmr.msra.gmra.mrb[0].mxu1 %vm1530_vm11, %v1510_v20  ;;  %v483_v51 = vrot.slane %v254_v57, 1 }
 0x1ef   : > { %v3724_v39 = vpop.permute.xlu1 %725  ;;  %v487_v3 = vsel %vm305_vm0, %v484_v29, %v486_v22  ;;  %v492_v47 = vsel %vm386_vm1, %v489_v56, %v491_v55 }
 0x1f0   : > { %v1010_v31 = vpop.permute.xlu0 %1009  ;;  %v1348_v20 = vsel %vm1327_vm5, %v3211_v10, %v3724_v39 }
 0x1f1   : > { %935 = vrot.lane.b32.xlu1 %v4154_v50, %s2339_s29  ;;  %v1445_v37 = vsel %vm1426_vm8, %v1412_v1, %v1010_v31  ;;  %v485_v31 = vsel %vm305_vm0, %v483_v51, %v484_v29 }
 0x1f2   : > { %1219 = vrot.lane.b32.xlu0 %v4154_v50, %s2342_s11 }
 0x1f3   : > { %v1106_v23 = vpop.permute.xlu1 %1105 }
 0x1f4   : > { %v1012_v40 = vpop.permute.xlu0 %1011  ;;  %v1478_v43 = vsel %vm1459_vm9, %v1445_v37, %v1106_v23 }
 0x1f5   : > { %745 = vrot.lane.b32.xlu1 %v251_v26, %s2337_s23  ;;  %v1446_v54 = vsel %vm1426_vm8, %v1413_v46, %v1012_v40 }
 0x1f6   : > { %1029 = vrot.lane.b32.xlu0 %v251_v26, %s2340_s7  ;;  %v488_v26 = vrot.slane %v254_v57, 2 }
 0x1f7   : > { %v3737_v18 = vpop.permute.xlu1 %821 }
 0x1f8   : > { %v3740_v35 = vpop.permute.xlu0 %727  ;;  %v1381_v50 = vsel %vm1360_vm6, %v1348_v20, %v3737_v18  ;;  %v490_v1 = vsel %vm386_vm1, %v488_v26, %v489_v56 }
 0x1f9   : > { %1125 = vrot.lane.b32.xlu1 %v472_v17, %s2341_s10 }
 0x1fa   : > { %1031 = vrot.lane.b32.xlu0 %v252_v11, %s2340_s7 }
 0x1fb   : > { %v1202_v45 = vpop.permute.xlu1 %1201 }
 0x1fc   : > { %v1511_v60 = vsel %vm1492_vm10, %v1478_v43, %v1202_v45  ;;  %v1108_v27 = vpop.permute.xlu0 %1107  ;;  %v1349_v45 = vsel %vm1327_vm5, %v3208_v30, %v3740_v35 }
 0x1fd   : > { %841 = vrot.lane.b32.xlu1 %v472_v17, %s2338_s24  ;;  %2223 = vmatprep.mubr.msk.f32.mxu1 %vm1530_vm11, %v1511_v60  ;;  %v1479_v0 = vsel %vm1459_vm9, %v1446_v54, %v1108_v27 }
 0x1fe   : > { %747 = vrot.lane.b32.xlu0 %v252_v11, %s2337_s23 }
 0x1ff   : > { %v918_v48 = vpop.permute.xlu1 %917 }
 0x200   : > { %v3757_v7 = vpop.permute.xlu0 %823  ;;  %v1414_v23 = vsel %vm1393_vm7, %v1381_v50, %v918_v48 }
 0x201   : > { %1221 = vrot.lane.b32.xlu1 %v477_v16, %s2342_s11  ;;  %v1382_v60 = vsel %vm1360_vm6, %v1349_v45, %v3757_v7 }
 0x202   : > { %1127 = vrot.lane.b32.xlu0 %v474_v21, %s2341_s10 }
 0x203   : > { %v920_v15 = vpop.permute.xlu1 %919 }
 0x204   : > { %v1204_v19 = vpop.permute.xlu0 %1203  ;;  %v1415_v27 = vsel %vm1393_vm7, %v1382_v60, %v920_v15 }
 0x205   : > { %v1512_v62 = vsel %vm1492_vm10, %v1479_v0, %v1204_v19  ;;  %937 = vrot.lane.b32.xlu1 %v477_v16, %s2339_s29 }
 0x206   : > { %843 = vrot.lane.b32.xlu0 %v474_v21, %s2338_s24  ;;  %2224 = vmatmul.mubr.msk.f32.gmra.mrb[2].mxu1 %vm1530_vm11, %v1512_v62  ;;  %s3918_s24 = scalar_lea.vmem %s3947_s3, %s2113_s20 }
 0x207   : > { %v3771_v13 = vpop.permute.xlu1 %729 }
 0x208   : > { %v1014_v38 = vpop.permute.xlu0 %1013  ;;  %v1350_v19 = vsel %vm1327_vm5, %v3227_v36, %v3771_v13 }
 0x209   : > { %939 = vrot.lane.b32.xlu1 %v479_v52, %s2339_s29  ;;  %v1447_v58 = vsel %vm1426_vm8, %v1414_v23, %v1014_v38 }
 0x20a   : > { %1223 = vrot.lane.b32.xlu0 %v479_v52, %s2342_s11 }
 0x20b   : > { %v1110_v53 = vpop.permute.xlu1 %1109 }
 0x20c   : > { %v1016_v41 = vpop.permute.xlu0 %1015  ;;  %v1480_v18 = vsel %vm1459_vm9, %v1447_v58, %v1110_v53 }
 0x20d   : > { %1035 = vrot.lane.b32.xlu1 %v255_v5, %s2340_s7  ;;  %v1448_v16 = vsel %vm1426_vm8, %v1415_v27, %v1016_v41 }
 0x20e   : > { %1033 = vrot.lane.b32.xlu0 %v254_v57, %s2340_s7 }
 0x20f   : > { %v826_v11 = vpop.permute.xlu1 %825 }
 0x210   : > { %v732_v14 = vpop.permute.xlu0 %731  ;;  %v2198_v6 = vpop.f32.mrb[0].mxu0  ;;  %v1383_v52 = vsel %vm1360_vm6, %v1350_v19, %v826_v11 }
 0x211   : > { %1857 = vst [vmem:[%s3783_s21 + $0x8] sm:$0xff] %v2198_v6  ;;  %v1926_v40 = vmul.f32 %v2198_v6, %v2198_v6  ;;  %1131 = vrot.lane.b32.xlu1 %v487_v3, %s2341_s10  ;;  %v1697_v17 = vpop.f32.mrb[1].mxu0  ;;  %v1351_v13 = vsel %vm1327_vm5, %v3224_v63, %v732_v14 }
 0x212   : > { %1856 = vst [vmem:[%s3783_s21] sm:$0xff] %v1697_v17  ;;  %v1888_v10 = vadd.f32 %v2198_v6, %v1697_v17  ;;  %v1925_v39 = vmul.f32 %v1697_v17, %v1697_v17  ;;  %1129 = vrot.lane.b32.xlu0 %v485_v31, %s2341_s10 }
 0x213   : > { %v1206_v8 = vpop.permute.xlu1 %1205 }
 0x214   : > { %v1957_v37 = vadd.f32 %v1926_v40, %v1925_v39  ;;  %v1513_v34 = vsel %vm1492_vm10, %v1480_v18, %v1206_v8  ;;  %v1112_v42 = vpop.permute.xlu0 %1111 }
 0x215   : > { %1227 = vrot.lane.b32.xlu1 %v492_v47, %s2342_s11  ;;  %2226 = vmatprep.mubr.msk.f32.mxu1 %vm1530_vm11, %v1513_v34  ;;  %v1481_v21 = vsel %vm1459_vm9, %v1448_v16, %v1112_v42 }
 0x216   : > { %1225 = vrot.lane.b32.xlu0 %v490_v1, %s2342_s11 }
 0x217   : > { %v922_v43 = vpop.permute.xlu1 %921 }
 0x218   : > { %v828_v24 = vpop.permute.xlu0 %827  ;;  %v1416_v29 = vsel %vm1393_vm7, %v1383_v52, %v922_v43 }
 0x219   : > { %v1384_v20 = vsel %vm1360_vm6, %v1351_v13, %v828_v24 }
 0x21b   : > { %v924_v48 = vpop.permute.xlu1 %923 }
 0x21c   : > { %v1208_v59 = vpop.permute.xlu0 %1207  ;;  %v1417_v26 = vsel %vm1393_vm7, %v1384_v20, %v924_v48 }
 0x21d   : > { %v1514_v32 = vsel %vm1492_vm10, %v1481_v21, %v1208_v59 }
 0x21e   : > { %2227 = vmatmul.mubr.msk.f32.gmra.mrb[4].mxu1 %vm1530_vm11, %v1514_v32 }
 0x21f   : > { %v734_v46 = vpop.permute.xlu1 %733 }
 0x220   : > { %v1018_v25 = vpop.permute.xlu0 %1017  ;;  %v1352_v34 = vsel %vm1327_vm5, %v3243_v61, %v734_v46 }
 0x221   : > { %v1449_v22 = vsel %vm1426_vm8, %v1416_v29, %v1018_v25 }
 0x223   : > { %v1114_v30 = vpop.permute.xlu1 %1113 }
 0x224   : > { %v1020_v35 = vpop.permute.xlu0 %1019  ;;  %v2201_v54 = vpop.f32.mrb[2].mxu0  ;;  %v1482_v51 = vsel %vm1459_vm9, %v1449_v22, %v1114_v30 }
 0x225   : > { %1859 = vst [vmem:[%s3783_s21 + $0x18] sm:$0xff] %v2201_v54  ;;  %v1707_v0 = vpop.f32.mrb[3].mxu0  ;;  %v1928_v5 = vmul.f32 %v2201_v54, %v2201_v54  ;;  %v1450_v11 = vsel %vm1426_vm8, %v1417_v26, %v1020_v35 }
 0x226   : > { %1858 = vst [vmem:[%s3783_s21 + $0x10] sm:$0xff] %v1707_v0  ;;  %v1889_v7 = vadd.f32 %v1888_v10, %v1707_v0  ;;  %v1927_v15 = vmul.f32 %v1707_v0, %v1707_v0 }
 0x227   : > { %v830_v62 = vpop.permute.xlu1 %829 }
 0x228   : > { %v1958_v28 = vadd.f32 %v1957_v37, %v1927_v15  ;;  %v736_v38 = vpop.permute.xlu0 %735  ;;  %v1890_v57 = vadd.f32 %v2201_v54, %v1889_v7  ;;  %v1385_v43 = vsel %vm1360_vm6, %v1352_v34, %v830_v62 }
 0x229   : > { %v1353_v61 = vsel %vm1327_vm5, %v3240_v2, %v736_v38 }
 0x22a   : > { %v1959_v53 = vadd.f32 %v1958_v28, %v1928_v5 }
 0x22b   : > { %v1210_v41 = vpop.permute.xlu1 %1209 }
 0x22c   : > { %v1515_v56 = vsel %vm1492_vm10, %v1482_v51, %v1210_v41  ;;  %v1116_v3 = vpop.permute.xlu0 %1115 }
 0x22d   : > { %2229 = vmatprep.mubr.msk.f32.mxu1 %vm1530_vm11, %v1515_v56  ;;  %v1483_v50 = vsel %vm1459_vm9, %v1450_v11, %v1116_v3 }
 0x22f   : > { %v926_v36 = vpop.permute.xlu1 %925 }
 0x230   : > { %v832_v55 = vpop.permute.xlu0 %831  ;;  %v1418_v24 = vsel %vm1393_vm7, %v1385_v43, %v926_v36 }
 0x231   : > { %v1386_v46 = vsel %vm1360_vm6, %v1353_v61, %v832_v55 }
 0x233   : > { %v928_v31 = vpop.permute.xlu1 %927 }
 0x234   : > { %v1212_v6 = vpop.permute.xlu0 %1211  ;;  %v1419_v25 = vsel %vm1393_vm7, %v1386_v46, %v928_v31 }
 0x235   : > { %v1516_v23 = vsel %vm1492_vm10, %v1483_v50, %v1212_v6 }
 0x236   : > { %2230 = vmatmul.mubr.msk.f32.gmra.mrb[6].mxu1 %vm1530_vm11, %v1516_v23 }
 0x237   : > { %v738_v40 = vpop.permute.xlu1 %737 }
 0x238   : > { %v1022_v17 = vpop.permute.xlu0 %1021  ;;  %v2204_v58 = vpop.f32.mrb[4].mxu0  ;;  %v1354_v51 = vsel %vm1327_vm5, %v3259_v49, %v738_v40 }
 0x239   : > { %1861 = vst [vmem:[%s3783_s21 + $0x28] sm:$0xff] %v2204_v58  ;;  %v1717_v63 = vpop.f32.mrb[5].mxu0  ;;  %v1930_v47 = vmul.f32 %v2204_v58, %v2204_v58  ;;  %v1451_v60 = vsel %vm1426_vm8, %v1418_v24, %v1022_v17 }
 0x23a   : > { %1860 = vst [vmem:[%s3783_s21 + $0x20] sm:$0xff] %v1717_v63  ;;  %v1891_v14 = vadd.f32 %v1890_v57, %v1717_v63  ;;  %v1929_v10 = vmul.f32 %v1717_v63, %v1717_v63 }
 0x23b   : > { %v1118_v39 = vpop.permute.xlu1 %1117 }
 0x23c   : > { %v1960_v18 = vadd.f32 %v1959_v53, %v1929_v10  ;;  %v1024_v8 = vpop.permute.xlu0 %1023  ;;  %v1892_v1 = vadd.f32 %v2204_v58, %v1891_v14  ;;  %v1484_v27 = vsel %vm1459_vm9, %v1451_v60, %v1118_v39 }
 0x23d   : > { %v1452_v30 = vsel %vm1426_vm8, %v1419_v25, %v1024_v8 }
 0x23e   : > { %v1961_v37 = vadd.f32 %v1960_v18, %v1930_v47 }
 0x23f   : > { %v834_v42 = vpop.permute.xlu1 %833 }
 0x240   : > { %v740_v45 = vpop.permute.xlu0 %739  ;;  %v1387_v56 = vsel %vm1360_vm6, %v1354_v51, %v834_v42 }
 0x241   : > { %v1355_v49 = vsel %vm1327_vm5, %v3256_v33, %v740_v45 }
 0x243   : > { %v1214_v16 = vpop.permute.xlu1 %1213 }
 0x244   : > { %v1517_v48 = vsel %vm1492_vm10, %v1484_v27, %v1214_v16  ;;  %v1120_v21 = vpop.permute.xlu0 %1119 }
 0x245   : > { %2232 = vmatprep.mubr.msk.f32.mxu1 %vm1530_vm11, %v1517_v48  ;;  %v1485_v54 = vsel %vm1459_vm9, %v1452_v30, %v1120_v21 }
 0x247   : > { %v930_v59 = vpop.permute.xlu1 %929 }
 0x248   : > { %v836_v32 = vpop.permute.xlu0 %835  ;;  %v1420_v36 = vsel %vm1393_vm7, %v1387_v56, %v930_v59 }
 0x249   : > { %v1388_v23 = vsel %vm1360_vm6, %v1355_v49, %v836_v32 }
 0x24b   : > { %v932_v35 = vpop.permute.xlu1 %931 }
 0x24c   : > { %v1216_v0 = vpop.permute.xlu0 %1215  ;;  %v2207_v7 = vpop.f32.mrb[6].mxu0  ;;  %v1421_v17 = vsel %vm1393_vm7, %v1388_v23, %v932_v35 }
 0x24d   : > { %v1518_v15 = vsel %vm1492_vm10, %v1485_v54, %v1216_v0  ;;  %1863 = vst [vmem:[%s3783_s21 + $0x38] sm:$0xff] %v2207_v7  ;;  %v1727_v19 = vpop.f32.mrb[7].mxu0  ;;  %v1932_v5 = vmul.f32 %v2207_v7, %v2207_v7 }
 0x24e   : > { %1862 = vst [vmem:[%s3783_s21 + $0x30] sm:$0xff] %v1727_v19  ;;  %v1893_v62 = vadd.f32 %v1892_v1, %v1727_v19  ;;  %v1931_v52 = vmul.f32 %v1727_v19, %v1727_v19  ;;  %2233 = vmatmul.mubr.msk.f32.gmra.mrb[8].mxu1 %vm1530_vm11, %v1518_v15 }
 0x24f   : > { %v742_v2 = vpop.permute.xlu1 %741 }
 0x250   : > { %v1962_v28 = vadd.f32 %v1961_v37, %v1931_v52  ;;  %v1026_v38 = vpop.permute.xlu0 %1025  ;;  %v1894_v57 = vadd.f32 %v2207_v7, %v1893_v62  ;;  %v1356_v24 = vsel %vm1327_vm5, %v3275_v44, %v742_v2 }
 0x251   : > { %v1453_v13 = vsel %vm1426_vm8, %v1420_v36, %v1026_v38 }
 0x252   : > { %v1963_v29 = vadd.f32 %v1962_v28, %v1932_v5 }
 0x253   : > { %v1122_v22 = vpop.permute.xlu1 %1121 }
 0x254   : > { %v1028_v53 = vpop.permute.xlu0 %1027  ;;  %v1486_v55 = vsel %vm1459_vm9, %v1453_v13, %v1122_v22 }
 0x255   : > { %v1454_v14 = vsel %vm1426_vm8, %v1421_v17, %v1028_v53 }
 0x257   : > { %v838_v41 = vpop.permute.xlu1 %837 }
 0x258   : > { %v744_v3 = vpop.permute.xlu0 %743  ;;  %v1389_v27 = vsel %vm1360_vm6, %v1356_v24, %v838_v41 }
 0x259   : > { %v1357_v44 = vsel %vm1327_vm5, %v3272_v9, %v744_v3 }
 0x25b   : > { %v1218_v20 = vpop.permute.xlu1 %1217 }
 0x25c   : > { %v1519_v26 = vsel %vm1492_vm10, %v1486_v55, %v1218_v20  ;;  %v1124_v11 = vpop.permute.xlu0 %1123 }
 0x25d   : > { %2235 = vmatprep.mubr.msk.f32.mxu1 %vm1530_vm11, %v1519_v26  ;;  %v1487_v39 = vsel %vm1459_vm9, %v1454_v14, %v1124_v11 }
 0x25f   : > { %v934_v31 = vpop.permute.xlu1 %933 }
 0x260   : > { %v840_v50 = vpop.permute.xlu0 %839  ;;  %v2210_v6 = vpop.f32.mrb[8].mxu0  ;;  %v1422_v48 = vsel %vm1393_vm7, %v1389_v27, %v934_v31 }
 0x261   : > { %1865 = vst [vmem:[%s3783_s21 + $0x48] sm:$0xff] %v2210_v6  ;;  %v1737_v40 = vpop.f32.mrb[9].mxu0  ;;  %v1934_v47 = vmul.f32 %v2210_v6, %v2210_v6  ;;  %v1390_v35 = vsel %vm1360_vm6, %v1357_v44, %v840_v50 }
 0x262   : > { %1864 = vst [vmem:[%s3783_s21 + $0x40] sm:$0xff] %v1737_v40  ;;  %v1895_v58 = vadd.f32 %v1894_v57, %v1737_v40  ;;  %v1933_v63 = vmul.f32 %v1737_v40, %v1737_v40 }
 0x263   : > { %v936_v10 = vpop.permute.xlu1 %935 }
 0x264   : > { %v1964_v18 = vadd.f32 %v1963_v29, %v1933_v63  ;;  %v1220_v8 = vpop.permute.xlu0 %1219  ;;  %v1896_v33 = vadd.f32 %v2210_v6, %v1895_v58  ;;  %v1423_v0 = vsel %vm1393_vm7, %v1390_v35, %v936_v10 }
 0x265   : > { %v1520_v1 = vsel %vm1492_vm10, %v1487_v39, %v1220_v8 }
 0x266   : > { %2236 = vmatmul.mubr.msk.f32.gmra.mrb[10].mxu1 %vm1530_vm11, %v1520_v1  ;;  %v1965_v37 = vadd.f32 %v1964_v18, %v1934_v47 }
 0x267   : > { %v746_v34 = vpop.permute.xlu1 %745 }
 0x268   : > { %v1030_v42 = vpop.permute.xlu0 %1029  ;;  %v1358_v56 = vsel %vm1327_vm5, %v3291_v4, %v746_v34 }
 0x269   : > { %v1455_v21 = vsel %vm1426_vm8, %v1422_v48, %v1030_v42 }
 0x26b   : > { %v1126_v43 = vpop.permute.xlu1 %1125 }
 0x26c   : > { %v1032_v45 = vpop.permute.xlu0 %1031  ;;  %v1488_v59 = vsel %vm1459_vm9, %v1455_v21, %v1126_v43 }
 0x26d   : > { %v1456_v15 = vsel %vm1426_vm8, %v1423_v0, %v1032_v45 }
 0x26f   : > { %v842_v60 = vpop.permute.xlu1 %841 }
 0x270   : > { %v748_v16 = vpop.permute.xlu0 %747  ;;  %v1391_v13 = vsel %vm1360_vm6, %v1358_v56, %v842_v60 }
 0x271   : > { %v1359_v51 = vsel %vm1327_vm5, %v3288_v12, %v748_v16 }
 0x273   : > { %v1222_v61 = vpop.permute.xlu1 %1221 }
 0x274   : > { %v1521_v32 = vsel %vm1492_vm10, %v1488_v59, %v1222_v61  ;;  %v1128_v46 = vpop.permute.xlu0 %1127 }
 0x275   : > { %2238 = vmatprep.mubr.msk.f32.mxu1 %vm1530_vm11, %v1521_v32  ;;  %v1489_v2 = vsel %vm1459_vm9, %v1456_v15, %v1128_v46 }
 0x277   : > { %v938_v25 = vpop.permute.xlu1 %937 }
 0x278   : > { %v844_v30 = vpop.permute.xlu0 %843  ;;  %v1424_v20 = vsel %vm1393_vm7, %v1391_v13, %v938_v25 }
 0x279   : > { %v2213_v54 = vpop.f32.mrb[10].mxu0  ;;  %v1392_v3 = vsel %vm1360_vm6, %v1359_v51, %v844_v30 }
 0x27a   : > { %1867 = vst [vmem:[%s3783_s21 + $0x58] sm:$0xff] %v2213_v54  ;;  %v1747_v7 = vpop.f32.mrb[11].mxu0  ;;  %v1936_v28 = vmul.f32 %v2213_v54, %v2213_v54 }
 0x27b   : > { %1866 = vst [vmem:[%s3783_s21 + $0x50] sm:$0xff] %v1747_v7  ;;  %v1897_v19 = vadd.f32 %v1896_v33, %v1747_v7  ;;  %v1935_v62 = vmul.f32 %v1747_v7, %v1747_v7  ;;  %v940_v52 = vpop.permute.xlu1 %939 }
 0x27c   : > { %v1224_v5 = vpop.permute.xlu0 %1223  ;;  %v1425_v55 = vsel %vm1393_vm7, %v1392_v3, %v940_v52 }
 0x27d   : > { %v1966_v38 = vadd.f32 %v1965_v37, %v1935_v62  ;;  %v1522_v9 = vsel %vm1492_vm10, %v1489_v2, %v1224_v5  ;;  %v1898_v57 = vadd.f32 %v2213_v54, %v1897_v19  ;;  %v2343_v54 = vmov 0.0  }
 0x27e   : > { %2239 = vmatmul.mubr.msk.f32.gmra.mrb[12].mxu1 %vm1530_vm11, %v1522_v9  ;;  %1998 = vst [vmem:[%s3918_s24] sm:$0x3] %v2343_v54 }
 0x27f   : > { %v1036_v29 = vpop.permute.xlu1 %1035  ;;  %v1967_v22 = vadd.f32 %v1966_v38, %v1936_v28 }
 0x280   : > { %v1034_v53 = vpop.permute.xlu0 %1033  ;;  %v1458_v26 = vsel %vm1426_vm8, %v1425_v55, %v1036_v29 }
 0x281   : > { %v1457_v11 = vsel %vm1426_vm8, %v1424_v20, %v1034_v53 }
 0x283   : > { %v1132_v41 = vpop.permute.xlu1 %1131 }
 0x284   : > { %v1130_v36 = vpop.permute.xlu0 %1129  ;;  %v1491_v12 = vsel %vm1459_vm9, %v1458_v26, %v1132_v41 }
 0x285   : > { %v1490_v4 = vsel %vm1459_vm9, %v1457_v11, %v1130_v36 }
 0x287   : > { %v1228_v31 = vpop.permute.xlu1 %1227 }
 0x288   : > { %v1524_v49 = vsel %vm1492_vm10, %v1491_v12, %v1228_v31  ;;  %v1226_v50 = vpop.permute.xlu0 %1225 }
 0x289   : > { %v1523_v6 = vsel %vm1492_vm10, %v1490_v4, %v1226_v50 }
 0x28a   : > { %2241 = vmatprep.mubr.msk.f32.mxu1 %vm1530_vm11, %v1523_v6 }
 0x28b   : > { %2242 = vmatmul.mubr.msk.f32.gmra.mrb[14].mxu1 %vm1530_vm11, %v1524_v49 }
 0x291   : > { %v2216_v23 = vpop.f32.mrb[12].mxu0 }
 0x292   : > { %1869 = vst [vmem:[%s3783_s21 + $0x68] sm:$0xff] %v2216_v23  ;;  %v1757_v40 = vpop.f32.mrb[13].mxu0  ;;  %v1938_v63 = vmul.f32 %v2216_v23, %v2216_v23 }
 0x293   : > { %1868 = vst [vmem:[%s3783_s21 + $0x60] sm:$0xff] %v1757_v40  ;;  %v1899_v17 = vadd.f32 %v1898_v57, %v1757_v40  ;;  %v1937_v58 = vmul.f32 %v1757_v40, %v1757_v40 }
 0x295   : > { %v1968_v14 = vadd.f32 %v1967_v22, %v1937_v58  ;;  %v1900_v10 = vadd.f32 %v2216_v23, %v1899_v17 }
 0x297   : > { %v1969_v39 = vadd.f32 %v1968_v14, %v1938_v63 }
 0x2a9   : > { %v2219_v47 = vpop.f32.mrb[14].mxu0 }
 0x2aa   : > { %1871 = vst [vmem:[%s3783_s21 + $0x78] sm:$0xff] %v2219_v47  ;;  %v1767_v18 = vpop.f32.mrb[15].mxu0  ;;  %v1940_v1 = vmul.f32 %v2219_v47, %v2219_v47 }
 0x2ab   : > { %1870 = vst [vmem:[%s3783_s21 + $0x70] sm:$0xff] %v1767_v18  ;;  %v1901_v8 = vadd.f32 %v1900_v10, %v1767_v18  ;;  %v1939_v33 = vmul.f32 %v1767_v18, %v1767_v18 }
 0x2ad   : > { %v1902_v37 = vadd.f32 %v2219_v47, %v1901_v8  ;;  %v1970_v34 = vadd.f32 %v1969_v39, %v1939_v33 }
 0x2af   : > { %v1971_v42 = vadd.f32 %v1970_v34, %v1940_v1 }
 0x2c1   : > { %v2222_v43 = vpop.f32.mrb[0].mxu1 }
 0x2c2   : > { %1873 = vst [vmem:[%s3783_s21 + $0x88] sm:$0xff] %v2222_v43  ;;  %v1777_v45 = vpop.f32.mrb[1].mxu1  ;;  %v1942_v27 = vmul.f32 %v2222_v43, %v2222_v43 }
 0x2c3   : > { %1872 = vst [vmem:[%s3783_s21 + $0x80] sm:$0xff] %v1777_v45  ;;  %v1903_v24 = vadd.f32 %v1902_v37, %v1777_v45  ;;  %v1941_v60 = vmul.f32 %v1777_v45, %v1777_v45 }
 0x2c5   : > { %v1972_v16 = vadd.f32 %v1971_v42, %v1941_v60  ;;  %v1904_v48 = vadd.f32 %v2222_v43, %v1903_v24 }
 0x2c7   : > { %v1973_v21 = vadd.f32 %v1972_v16, %v1942_v27 }
 0x2d9   : > { %v2225_v59 = vpop.f32.mrb[2].mxu1 }
 0x2da   : > { %1875 = vst [vmem:[%s3783_s21 + $0x98] sm:$0xff] %v2225_v59  ;;  %v1787_v61 = vpop.f32.mrb[3].mxu1  ;;  %v1944_v25 = vmul.f32 %v2225_v59, %v2225_v59 }
 0x2db   : > { %1874 = vst [vmem:[%s3783_s21 + $0x90] sm:$0xff] %v1787_v61  ;;  %v1905_v32 = vadd.f32 %v1904_v48, %v1787_v61  ;;  %v1943_v46 = vmul.f32 %v1787_v61, %v1787_v61 }
 0x2dd   : > { %v1974_v44 = vadd.f32 %v1973_v21, %v1943_v46  ;;  %v1906_v30 = vadd.f32 %v2225_v59, %v1905_v32 }
 0x2df   : > { %v1975_v35 = vadd.f32 %v1974_v44, %v1944_v25  ;;  %v1999_v44 = vld [vmem:[%s3918_s24] sm:$0x3] }
 0x2f1   : > { %v2228_v0 = vpop.f32.mrb[4].mxu1 }
 0x2f2   : > { %1877 = vst [vmem:[%s3783_s21 + $0xa8] sm:$0xff] %v2228_v0  ;;  %v1797_v7 = vpop.f32.mrb[5].mxu1  ;;  %v1946_v62 = vmul.f32 %v2228_v0, %v2228_v0 }
 0x2f3   : > { %1876 = vst [vmem:[%s3783_s21 + $0xa0] sm:$0xff] %v1797_v7  ;;  %v1907_v15 = vadd.f32 %v1906_v30, %v1797_v7  ;;  %v1945_v19 = vmul.f32 %v1797_v7, %v1797_v7 }
 0x2f5   : > { %v1976_v52 = vadd.f32 %v1975_v35, %v1945_v19  ;;  %v1908_v2 = vadd.f32 %v2228_v0, %v1907_v15 }
 0x2f7   : > { %v1977_v5 = vadd.f32 %v1976_v52, %v1946_v62 }
 0x309   : > { %v2231_v28 = vpop.f32.mrb[6].mxu1 }
 0x30a   : > { %1879 = vst [vmem:[%s3783_s21 + $0xb8] sm:$0xff] %v2231_v28  ;;  %v1807_v38 = vpop.f32.mrb[7].mxu1  ;;  %v1948_v29 = vmul.f32 %v2231_v28, %v2231_v28 }
 0x30b   : > { %1878 = vst [vmem:[%s3783_s21 + $0xb0] sm:$0xff] %v1807_v38  ;;  %v1909_v9 = vadd.f32 %v1908_v2, %v1807_v38  ;;  %v1947_v57 = vmul.f32 %v1807_v38, %v1807_v38 }
 0x30d   : > { %v1978_v22 = vadd.f32 %v1977_v5, %v1947_v57  ;;  %v1910_v53 = vadd.f32 %v2231_v28, %v1909_v9 }
 0x30f   : > { %v1979_v51 = vadd.f32 %v1978_v22, %v1948_v29 }
 0x321   : > { %v2234_v41 = vpop.f32.mrb[8].mxu1 }
 0x322   : > { %1881 = vst [vmem:[%s3783_s21 + $0xc8] sm:$0xff] %v2234_v41  ;;  %v1817_v56 = vpop.f32.mrb[9].mxu1  ;;  %v1950_v13 = vmul.f32 %v2234_v41, %v2234_v41 }
 0x323   : > { %1880 = vst [vmem:[%s3783_s21 + $0xc0] sm:$0xff] %v1817_v56  ;;  %v1911_v3 = vadd.f32 %v1910_v53, %v1817_v56  ;;  %v1949_v36 = vmul.f32 %v1817_v56, %v1817_v56 }
 0x325   : > { %v1980_v55 = vadd.f32 %v1979_v51, %v1949_v36  ;;  %v1912_v20 = vadd.f32 %v2234_v41, %v1911_v3 }
 0x327   : > { %v1981_v26 = vadd.f32 %v1980_v55, %v1950_v13 }
 0x339   : > { %v2237_v11 = vpop.f32.mrb[10].mxu1 }
 0x33a   : > { %1883 = vst [vmem:[%s3783_s21 + $0xd8] sm:$0xff] %v2237_v11  ;;  %v1827_v12 = vpop.f32.mrb[11].mxu1  ;;  %v1952_v49 = vmul.f32 %v2237_v11, %v2237_v11 }
 0x33b   : > { %1882 = vst [vmem:[%s3783_s21 + $0xd0] sm:$0xff] %v1827_v12  ;;  %v1913_v31 = vadd.f32 %v1912_v20, %v1827_v12  ;;  %v1951_v4 = vmul.f32 %v1827_v12, %v1827_v12 }
 0x33d   : > { %v1982_v50 = vadd.f32 %v1981_v26, %v1951_v4  ;;  %v1914_v6 = vadd.f32 %v2237_v11, %v1913_v31 }
 0x33f   : > { %v1983_v23 = vadd.f32 %v1982_v50, %v1952_v49 }
 0x351   : > { %v2240_v40 = vpop.f32.mrb[12].mxu1 }
 0x352   : > { %1885 = vst [vmem:[%s3783_s21 + $0xe8] sm:$0xff] %v2240_v40  ;;  %v1837_v17 = vpop.f32.mrb[13].mxu1  ;;  %v1954_v14 = vmul.f32 %v2240_v40, %v2240_v40 }
 0x353   : > { %1884 = vst [vmem:[%s3783_s21 + $0xe0] sm:$0xff] %v1837_v17  ;;  %v1915_v58 = vadd.f32 %v1914_v6, %v1837_v17  ;;  %v1953_v63 = vmul.f32 %v1837_v17, %v1837_v17 }
 0x355   : > { %v1984_v10 = vadd.f32 %v1983_v23, %v1953_v63  ;;  %v1916_v39 = vadd.f32 %v2240_v40, %v1915_v58 }
 0x357   : > { %v1985_v47 = vadd.f32 %v1984_v10, %v1954_v14 }
 0x35e   : > { %v2243_v18 = vpop.f32.mrb[14].mxu1 }
 0x35f   : > { %1887 = vst [vmem:[%s3783_s21 + $0xf8] sm:$0xff] %v2243_v18  ;;  %v1847_v8 = vpop.f32.mrb[15].mxu1  ;;  %v1956_v37 = vmul.f32 %v2243_v18, %v2243_v18 }
 0x360   : > { %1886 = vst [vmem:[%s3783_s21 + $0xf0] sm:$0xff] %v1847_v8  ;;  %v1917_v33 = vadd.f32 %v1916_v39, %v1847_v8  ;;  %v1955_v1 = vmul.f32 %v1847_v8, %v1847_v8 }
 0x362   : > { %v1918_v34 = vadd.f32 %v2243_v18, %v1917_v33  ;;  %v1986_v42 = vadd.f32 %v1985_v47, %v1955_v1 }
 0x364   : > { %v1919_v43 = vrot.slane %v1918_v34, 4  ;;  %v1987_v45 = vadd.f32 %v1986_v42, %v1956_v37 }
 0x366   : > { %v1920_v24 = vadd.f32 %v1919_v43, %v1918_v34  ;;  %v1988_v60 = vrot.slane %v1987_v45, 4 }
 0x368   : > { %v1921_v27 = vrot.slane %v1920_v24, 2  ;;  %v1989_v16 = vadd.f32 %v1988_v60, %v1987_v45 }
 0x36a   : > { %v1922_v48 = vadd.f32 %v1921_v27, %v1920_v24  ;;  %v1990_v21 = vrot.slane %v1989_v16, 2 }
 0x36c   : > { %v1923_v59 = vrot.slane %v1922_v48, 1  ;;  %v1991_v61 = vadd.f32 %v1990_v21, %v1989_v16 }
 0x36e   : > { %v1992_v32 = vrot.slane %v1991_v61, 1  ;;  %v1924_v46 = vadd.f32 %v1923_v59, %v1922_v48 }
 0x370   : > { %v1993_v25 = vadd.f32 %v1992_v32, %v1991_v61 }
 0x372   : > { %v2001_v30 = vsel %vm2000_vm12, %v1924_v46, %v1993_v25 }
 0x373   : > { %v2002_v35 = vadd.f32 %v2001_v30, %v1999_v44 }
 0x375   : > { %2003 = vst [vmem:[%s3918_s24] sm:$0x3] %v2002_v35 }
 0x376 PF: > { %s14_s14 = sadd.s32 1, %s2333_s14   ;;  %s4155_s12 = smov %s2329_s13 }
 0x377   : > { %p11_p6 = scmp.ge.s32.totalorder %s14_s14, 4   ;;  %s4156_s13 = smov %s4158_s15 }
 0x379   :  { %13 = sbr.rel (!%p11_p6) target bundleno = 2 (0x2), region = 75 }

</bundles_post_ra>
